<compile_context>
chip_gen: v7x
topology: tpu7x:2x2x1
jax: 0.10.0
libtpu: 0.0.40
codegen_flags: <defaults>
</compile_context>

<pallas_src>
import functools

import jax
import jax.numpy as jnp
from jax.experimental import pallas as pl
from jax.experimental.pallas import tpu as pltpu


# Market-1501 attribute heads (name -> op_neurons), mirroring MrktAttribute.
MARKET_ATTS = {
    "gender": 1, "hair": 1, "up": 1, "down": 1, "clothes": 1, "hat": 1,
    "backpack": 1, "bag": 1, "handbag": 1,
    "age": 4, "upcolor": 8, "downcolor": 9,
}

NP_PAD = 16   # per-head output width padded to a sublane-friendly 16 (max n_out = 9)


# ----------------------------------------------------------------------------
# Fused extractor kernel: conv(im2col matmul)+ReLU -> GAP (accumulated) -> FC
# ----------------------------------------------------------------------------
def _extractor_kernel(p_ref, cw_ref, cb_ref, fw_ref, fb_ref, o_ref, acc_ref,
                      *, hw_total, thw, mask_tail):
    t = pl.program_id(1)

    @pl.when(t == 0)
    def _():
        acc_ref[...] = jnp.zeros_like(acc_ref)

    # conv-as-matmul on the MXU, contracting the im2col K dim (trans_a matmul).
    # Result (thw, Cc): the 128-wide channel dim is lane-dense.
    conv = jax.lax.dot_general(
        p_ref[0], cw_ref[...],
        dimension_numbers=(((0,), (0,)), ((), ())),
        preferred_element_type=jnp.float32)                 # (thw, Cc) f32
    conv = jnp.maximum(conv + cb_ref[...], 0.0)             # bias + ReLU, f32

    if mask_tail:
        # HW was zero-padded up to a multiple of 128: padded rows would add
        # ReLU(bias) into the GAP sum, so mask them out.
        row = jax.lax.broadcasted_iota(jnp.int32, conv.shape, 0) + t * thw
        conv = jnp.where(row < hw_total, conv, 0.0)

    # Partial global-average-pool: one full-block accumulator update.
    acc_ref[...] += jnp.sum(conv, axis=0, keepdims=True)    # (1, Cc)

    # Finalize: divide by HW and apply the extractor FC, all in-kernel.
    @pl.when(t == pl.num_programs(1) - 1)
    def _():
        pooled = acc_ref[...] * (1.0 / hw_total)            # (1, Cc) f32
        feat = jnp.dot(pooled.astype(jnp.bfloat16), fw_ref[...],
                       preferred_element_type=jnp.float32)  # (1, F)
        o_ref[0] = (feat + fb_ref[...]).astype(o_ref.dtype)


def pallas_extractor(patches, conv_w, conv_b, fc_w, fc_b, *, hw_total, thw):
    B, Kp, HWp = patches.shape
    Cc = conv_w.shape[-1]
    F = fc_w.shape[-1]
    n_tiles = HWp // thw
    kernel = functools.partial(_extractor_kernel, hw_total=hw_total, thw=thw,
                               mask_tail=(HWp != hw_total))
    return pl.pallas_call(
        kernel,
        out_shape=jax.ShapeDtypeStruct((B, 1, F), jnp.bfloat16),
        grid=(B, n_tiles),
        in_specs=[
            pl.BlockSpec((1, Kp, thw), lambda b, t: (b, 0, t)),
            pl.BlockSpec((Kp, Cc), lambda b, t: (0, 0)),
            pl.BlockSpec((1, Cc), lambda b, t: (0, 0)),
            pl.BlockSpec((Cc, F), lambda b, t: (0, 0)),
            pl.BlockSpec((1, F), lambda b, t: (0, 0)),
        ],
        out_specs=pl.BlockSpec((1, 1, F), lambda b, t: (b, 0, 0)),
        scratch_shapes=[pltpu.VMEM((1, Cc), jnp.float32)],
        compiler_params=pltpu.CompilerParams(
            # batch axis parallel (v7x 2-TC split); HW-tile axis is the reduction
            dimension_semantics=("parallel", "arbitrary")),
    )(patches, conv_w, conv_b, fc_w, fc_b)


# ----------------------------------------------------------------------------
# Fused SubNet-heads kernel: 6 heads per grid step (2 steps total)
# ----------------------------------------------------------------------------
def _heads_kernel(x_ref, w1_ref, b1_ref, w2_ref, b2_ref, o_ref):
    # fc1: Linear (Dropout(0.5) is identity at inference) -> op_layer -> sigmoid.
    # TODO(synk): training-mode stochastic dropout is intentionally not emulated.
    # NOTE: hidden activation is cast to bf16 before the second matmul; outputs
    # may differ from a full-f32 reference by ~1e-2 (inference tolerance).
    x = x_ref[...]                                          # (B, F) bf16
    for a in range(w1_ref.shape[0]):                        # static unroll (6 heads)
        h = jnp.dot(x, w1_ref[a], preferred_element_type=jnp.float32)   # (B, H)
        h = h + b1_ref[a]
        # second layer stored transposed (Np, H): contract over H (trans_b)
        logits = jax.lax.dot_general(
            h.astype(jnp.bfloat16), w2_ref[a],
            dimension_numbers=(((1,), (1,)), ((), ())),
            preferred_element_type=jnp.float32)             # (B, Np)
        logits = logits + b2_ref[a]
        o_ref[a] = jax.nn.sigmoid(logits).astype(o_ref.dtype)


def pallas_heads(x, w1s, b1s, w2ts, b2s, *, a_blk=6):
    A, F, H = w1s.shape
    Np = w2ts.shape[1]
    B = x.shape[0]
    if A % a_blk != 0:
        a_blk = A
    return pl.pallas_call(
        _heads_kernel,
        out_shape=jax.ShapeDtypeStruct((A, B, Np), jnp.float32),
        grid=(A // a_blk,),
        in_specs=[
            pl.BlockSpec((B, F), lambda a: (0, 0)),
            pl.BlockSpec((a_blk, F, H), lambda a: (a, 0, 0)),
            pl.BlockSpec((a_blk, 1, H), lambda a: (a, 0, 0)),
            pl.BlockSpec((a_blk, Np, H), lambda a: (a, 0, 0)),
            pl.BlockSpec((a_blk, 1, Np), lambda a: (a, 0, 0)),
        ],
        out_specs=pl.BlockSpec((a_blk, B, Np), lambda a: (a, 0, 0)),
        compiler_params=pltpu.CompilerParams(
            dimension_semantics=("parallel",)),   # head blocks independent (v7x)
    )(x, w1s, b1s, w2ts, b2s)


# ----------------------------------------------------------------------------
# Glue (plain JAX): layout transpose + K-major im2col for the 3x3 stem conv
# ----------------------------------------------------------------------------
# TODO(synk): im2col could be built inside the kernel from the raw NHWC image
# (row-band BlockSpec with halo) to remove this HBM-materialized patch tensor.
def im2col_3x3_kmajor(x_nhwc, k_pad, hw_padded):
    B, H, W, C = x_nhwc.shape
    xp = jnp.pad(x_nhwc, ((0, 0), (1, 1), (1, 1), (0, 0)))
    cols = []
    for dy in range(3):
        for dx in range(3):
            cols.append(xp[:, dy:dy + H, dx:dx + W, :])     # (B, H, W, C)
    patches = jnp.stack(cols, axis=1)                       # (B, 9, H, W, C)
    patches = jnp.transpose(patches, (0, 1, 4, 2, 3))       # (B, 9, C, H, W)
    patches = patches.reshape(B, 9 * C, H * W)              # (B, K, HW) -- HW minor
    pad_k = k_pad - 9 * C
    pad_hw = hw_padded - H * W
    if pad_k or pad_hw:
        patches = jnp.pad(patches, ((0, 0), (0, pad_k), (0, pad_hw)))
    return patches                                           # (B, Kp, HWp)


def _pick_thw(hw_padded):
    # Largest lane-aligned tile (multiple of 128, <= 2048) that divides hw_padded.
    for cand in (2048, 1024, 512, 256, 128):
        if hw_padded % cand == 0:
            return cand
    return 128  # unreachable: hw_padded is always a multiple of 128


# ----------------------------------------------------------------------------
# Parameters (deterministic, in-script)
# ----------------------------------------------------------------------------
def init_params(key, *, cin=3, conv_c=128, extractor_op_features=128, hidden=512):
    k = 9 * cin
    k_pad = ((k + 7) // 8) * 8                               # 27 -> 32
    keys = jax.random.split(key, 4 + 2 * len(MARKET_ATTS))

    conv_w = 0.05 * jax.random.normal(keys[0], (k, conv_c), jnp.float32)
    conv_w = jnp.pad(conv_w, ((0, k_pad - k), (0, 0)))       # zero rows for padded K

    params = {
        "conv_w": conv_w.astype(jnp.bfloat16),                       # (Kp, Cc)
        "conv_b": 0.05 * jax.random.normal(keys[1], (1, conv_c), jnp.float32),
        "fc_w": (0.05 * jax.random.normal(
            keys[2], (conv_c, extractor_op_features), jnp.float32)).astype(jnp.bfloat16),
        "fc_b": 0.05 * jax.random.normal(keys[3], (1, extractor_op_features), jnp.float32),
    }

    w1_l, b1_l, w2_l, b2_l = [], [], [], []
    for idx, (att, n_out) in enumerate(MARKET_ATTS.items()):
        k1, k2 = keys[4 + 2 * idx], keys[5 + 2 * idx]
        w1 = 0.05 * jax.random.normal(k1, (extractor_op_features, hidden), jnp.float32)
        w2 = 0.05 * jax.random.normal(k2, (hidden, n_out), jnp.float32)
        # second head layer stored TRANSPOSED + sublane-padded: (NP_PAD, hidden)
        w2t = jnp.zeros((NP_PAD, hidden), jnp.float32).at[:n_out, :].set(w2.T)
        w1_l.append(w1.astype(jnp.bfloat16))
        b1_l.append(jnp.zeros((1, hidden), jnp.float32))
        w2_l.append(w2t.astype(jnp.bfloat16))
        b2_l.append(jnp.zeros((1, NP_PAD), jnp.float32))

    params["w1s"] = jnp.stack(w1_l)     # (A, F, 512)   bf16
    params["b1s"] = jnp.stack(b1_l)     # (A, 1, 512)   f32
    params["w2ts"] = jnp.stack(w2_l)    # (A, 16, 512)  bf16 (lane-dense, no 128-pad)
    params["b2s"] = jnp.stack(b2_l)     # (A, 1, 16)    f32
    return params


# ----------------------------------------------------------------------------
# MainNet.forward
# ----------------------------------------------------------------------------
def mainnet_forward(params, x_nchw):
    # NCHW -> NHWC
    x = jnp.transpose(x_nchw, (0, 2, 3, 1)).astype(jnp.float32)
    B, H, W, _ = x.shape
    HW = H * W
    hw_padded = ((HW + 127) // 128) * 128        # pad HW; kernel masks the tail
    thw = _pick_thw(hw_padded)                   # large lane-aligned HW tiles
    k_pad = params["conv_w"].shape[0]

    patches = im2col_3x3_kmajor(x, k_pad, hw_padded).astype(jnp.bfloat16)  # (B,Kp,HWp)

    # --- fused extractor: conv3x3+ReLU -> GAP -> FC, one kernel ---
    feats = pallas_extractor(
        patches, params["conv_w"], params["conv_b"],
        params["fc_w"], params["fc_b"], hw_total=HW, thw=thw)   # (B, 1, F) bf16
    img_features = feats.reshape(B, -1)                          # (B, F)

    # --- all SubNet heads, 2 grid steps of 6 heads each ---
    heads_out = pallas_heads(img_features, params["w1s"], params["b1s"],
                             params["w2ts"], params["b2s"])      # (A, B, 16) f32

    output = {}
    for idx, (att, n_out) in enumerate(MARKET_ATTS.items()):
        output[att] = heads_out[idx, :, :n_out]                  # slice off zero pads
    return output


if __name__ == "__main__":
    key = jax.random.PRNGKey(0)
    pkey, xkey = jax.random.split(key)

    params = init_params(pkey)
    x = jax.random.normal(xkey, (2, 3, 16, 16), jnp.float32)     # NCHW, like PyTorch

    fwd = jax.jit(mainnet_forward)
    out = fwd(params, x)
    out = jax.block_until_ready(out)

    # sanity: one output per attribute, sigmoid range, correct shapes
    for att, n_out in MARKET_ATTS.items():
        o = out[att]
        assert o.shape == (2, n_out), (att, o.shape)
        assert bool(jnp.all((o >= 0.0) & (o <= 1.0)))

    print("KERNEL_OK")
</pallas_src>

<mosaic_0001>
module attributes {stable_mosaic.version = 11 : i64} {
  func.func @_heads_kernel(%arg0: i32, %arg1: memref<2x128xbf16, #tpu.memory_space<vmem>>, %arg2: memref<6x128x512xbf16, #tpu.memory_space<vmem>>, %arg3: memref<6x1x512xf32, #tpu.memory_space<vmem>>, %arg4: memref<6x16x512xbf16, #tpu.memory_space<vmem>>, %arg5: memref<6x1x16xf32, #tpu.memory_space<vmem>>, %arg6: memref<6x2x16xf32, #tpu.memory_space<vmem>>) attributes {dimension_semantics = [#tpu.dimension_semantics<parallel>], iteration_bounds = array<i64: 2>, scalar_prefetch = 0 : i64, scratch_operands = 0 : i64, tpu.core_type = #tpu.core_type<tc>, window_params = [{pipeline_mode = #tpu.pipeline_mode<synchronous>, transform_indices = @transform_0, window_bounds = array<i64: 2, 128>}, {transform_indices = @transform_1, window_bounds = array<i64: 6, 128, 512>}, {transform_indices = @transform_2, window_bounds = array<i64: 6, 1, 512>}, {transform_indices = @transform_3, window_bounds = array<i64: 6, 16, 512>}, {transform_indices = @transform_4, window_bounds = array<i64: 6, 1, 16>}, {transform_indices = @transform_5, window_bounds = array<i64: 6, 2, 16>}]} {
    %c0 = arith.constant 0 : index
    %c0_0 = arith.constant 0 : index
    %0 = vector.load %arg1[%c0, %c0_0] : memref<2x128xbf16, #tpu.memory_space<vmem>>, vector<2x128xbf16>
    %c0_1 = arith.constant 0 : index
    %c0_2 = arith.constant 0 : index
    %c0_3 = arith.constant 0 : index
    %1 = vector.load %arg2[%c0_1, %c0_2, %c0_3] : memref<6x128x512xbf16, #tpu.memory_space<vmem>>, vector<1x128x512xbf16>
    %2 = vector.shape_cast %1 : vector<1x128x512xbf16> to vector<128x512xbf16>
    %cst = arith.constant dense<0.000000e+00> : vector<2x512xf32>
    %3 = tpu.matmul %0, %2, %cst {dimension_numbers = #tpu.dot_dimension_numbers<[1], [0], [0], [1], [0, 0, 1, 1], [], []>} : vector<2x128xbf16>, vector<128x512xbf16>, vector<2x512xf32> -> vector<2x512xf32>
    %c0_4 = arith.constant 0 : index
    %c0_5 = arith.constant 0 : index
    %c0_6 = arith.constant 0 : index
    %4 = vector.load %arg3[%c0_4, %c0_5, %c0_6] : memref<6x1x512xf32, #tpu.memory_space<vmem>>, vector<1x1x512xf32>
    %5 = vector.shape_cast %4 : vector<1x1x512xf32> to vector<1x512xf32>
    %6 = vector.broadcast %5 : vector<1x512xf32> to vector<2x512xf32>
    %7 = arith.addf %3, %6 : vector<2x512xf32>
    %8 = arith.truncf %7 : vector<2x512xf32> to vector<2x512xbf16>
    %c0_7 = arith.constant 0 : index
    %c0_8 = arith.constant 0 : index
    %c0_9 = arith.constant 0 : index
    %9 = vector.load %arg4[%c0_7, %c0_8, %c0_9] : memref<6x16x512xbf16, #tpu.memory_space<vmem>>, vector<1x16x512xbf16>
    %10 = vector.shape_cast %9 : vector<1x16x512xbf16> to vector<16x512xbf16>
    %cst_10 = arith.constant dense<0.000000e+00> : vector<2x16xf32>
    %11 = tpu.matmul %8, %10, %cst_10 {dimension_numbers = #tpu.dot_dimension_numbers<[1], [1], [0], [0], [0, 0, 1, 0], [], []>} : vector<2x512xbf16>, vector<16x512xbf16>, vector<2x16xf32> -> vector<2x16xf32>
    %c0_11 = arith.constant 0 : index
    %c0_12 = arith.constant 0 : index
    %c0_13 = arith.constant 0 : index
    %12 = vector.load %arg5[%c0_11, %c0_12, %c0_13] : memref<6x1x16xf32, #tpu.memory_space<vmem>>, vector<1x1x16xf32>
    %13 = vector.shape_cast %12 : vector<1x1x16xf32> to vector<1x16xf32>
    %14 = vector.broadcast %13 : vector<1x16xf32> to vector<2x16xf32>
    %15 = arith.addf %11, %14 : vector<2x16xf32>
    %16 = arith.negf %15 : vector<2x16xf32>
    %17 = math.exp %16 : vector<2x16xf32>
    %cst_14 = arith.constant 1.000000e+00 : f32
    %18 = vector.broadcast %cst_14 : f32 to vector<2x16xf32>
    %19 = arith.addf %18, %17 : vector<2x16xf32>
    %20 = arith.divf %18, %19 : vector<2x16xf32>
    %c0_15 = arith.constant 0 : index
    %c0_16 = arith.constant 0 : index
    %c0_17 = arith.constant 0 : index
    %21 = vector.load %arg6[%c0_15, %c0_16, %c0_17] : memref<6x2x16xf32, #tpu.memory_space<vmem>>, vector<1x2x16xf32>
    %22 = vector.shape_cast %21 : vector<1x2x16xf32> to vector<2x16xf32>
    %23 = vector.shape_cast %20 : vector<2x16xf32> to vector<1x2x16xf32>
    tpu.vector_store %arg6[%c0_15, %c0_16, %c0_17], %23 {strides = array<i32>} : memref<6x2x16xf32, #tpu.memory_space<vmem>>, vector<1x2x16xf32>,
    %c1 = arith.constant 1 : index
    %c0_18 = arith.constant 0 : index
    %c0_19 = arith.constant 0 : index
    %24 = vector.load %arg2[%c1, %c0_18, %c0_19] : memref<6x128x512xbf16, #tpu.memory_space<vmem>>, vector<1x128x512xbf16>
    %25 = vector.shape_cast %24 : vector<1x128x512xbf16> to vector<128x512xbf16>
    %cst_20 = arith.constant dense<0.000000e+00> : vector<2x512xf32>
    %26 = tpu.matmul %0, %25, %cst_20 {dimension_numbers = #tpu.dot_dimension_numbers<[1], [0], [0], [1], [0, 0, 1, 1], [], []>} : vector<2x128xbf16>, vector<128x512xbf16>, vector<2x512xf32> -> vector<2x512xf32>
    %c1_21 = arith.constant 1 : index
    %c0_22 = arith.constant 0 : index
    %c0_23 = arith.constant 0 : index
    %27 = vector.load %arg3[%c1_21, %c0_22, %c0_23] : memref<6x1x512xf32, #tpu.memory_space<vmem>>, vector<1x1x512xf32>
    %28 = vector.shape_cast %27 : vector<1x1x512xf32> to vector<1x512xf32>
    %29 = vector.broadcast %28 : vector<1x512xf32> to vector<2x512xf32>
    %30 = arith.addf %26, %29 : vector<2x512xf32>
    %31 = arith.truncf %30 : vector<2x512xf32> to vector<2x512xbf16>
    %c1_24 = arith.constant 1 : index
    %c0_25 = arith.constant 0 : index
    %c0_26 = arith.constant 0 : index
    %32 = vector.load %arg4[%c1_24, %c0_25, %c0_26] : memref<6x16x512xbf16, #tpu.memory_space<vmem>>, vector<1x16x512xbf16>
    %33 = vector.shape_cast %32 : vector<1x16x512xbf16> to vector<16x512xbf16>
    %cst_27 = arith.constant dense<0.000000e+00> : vector<2x16xf32>
    %34 = tpu.matmul %31, %33, %cst_27 {dimension_numbers = #tpu.dot_dimension_numbers<[1], [1], [0], [0], [0, 0, 1, 0], [], []>} : vector<2x512xbf16>, vector<16x512xbf16>, vector<2x16xf32> -> vector<2x16xf32>
    %c1_28 = arith.constant 1 : index
    %c0_29 = arith.constant 0 : index
    %c0_30 = arith.constant 0 : index
    %35 = vector.load %arg5[%c1_28, %c0_29, %c0_30] : memref<6x1x16xf32, #tpu.memory_space<vmem>>, vector<1x1x16xf32>
    %36 = vector.shape_cast %35 : vector<1x1x16xf32> to vector<1x16xf32>
    %37 = vector.broadcast %36 : vector<1x16xf32> to vector<2x16xf32>
    %38 = arith.addf %34, %37 : vector<2x16xf32>
    %39 = arith.negf %38 : vector<2x16xf32>
    %40 = math.exp %39 : vector<2x16xf32>
    %cst_31 = arith.constant 1.000000e+00 : f32
    %41 = vector.broadcast %cst_31 : f32 to vector<2x16xf32>
    %42 = arith.addf %41, %40 : vector<2x16xf32>
    %43 = arith.divf %41, %42 : vector<2x16xf32>
    %c1_32 = arith.constant 1 : index
    %c0_33 = arith.constant 0 : index
    %c0_34 = arith.constant 0 : index
    %44 = vector.load %arg6[%c1_32, %c0_33, %c0_34] : memref<6x2x16xf32, #tpu.memory_space<vmem>>, vector<1x2x16xf32>
    %45 = vector.shape_cast %44 : vector<1x2x16xf32> to vector<2x16xf32>
    %46 = vector.shape_cast %43 : vector<2x16xf32> to vector<1x2x16xf32>
    tpu.vector_store %arg6[%c1_32, %c0_33, %c0_34], %46 {strides = array<i32>} : memref<6x2x16xf32, #tpu.memory_space<vmem>>, vector<1x2x16xf32>,
    %c2 = arith.constant 2 : index
    %c0_35 = arith.constant 0 : index
    %c0_36 = arith.constant 0 : index
    %47 = vector.load %arg2[%c2, %c0_35, %c0_36] : memref<6x128x512xbf16, #tpu.memory_space<vmem>>, vector<1x128x512xbf16>
    %48 = vector.shape_cast %47 : vector<1x128x512xbf16> to vector<128x512xbf16>
    %cst_37 = arith.constant dense<0.000000e+00> : vector<2x512xf32>
    %49 = tpu.matmul %0, %48, %cst_37 {dimension_numbers = #tpu.dot_dimension_numbers<[1], [0], [0], [1], [0, 0, 1, 1], [], []>} : vector<2x128xbf16>, vector<128x512xbf16>, vector<2x512xf32> -> vector<2x512xf32>
    %c2_38 = arith.constant 2 : index
    %c0_39 = arith.constant 0 : index
    %c0_40 = arith.constant 0 : index
    %50 = vector.load %arg3[%c2_38, %c0_39, %c0_40] : memref<6x1x512xf32, #tpu.memory_space<vmem>>, vector<1x1x512xf32>
    %51 = vector.shape_cast %50 : vector<1x1x512xf32> to vector<1x512xf32>
    %52 = vector.broadcast %51 : vector<1x512xf32> to vector<2x512xf32>
    %53 = arith.addf %49, %52 : vector<2x512xf32>
    %54 = arith.truncf %53 : vector<2x512xf32> to vector<2x512xbf16>
    %c2_41 = arith.constant 2 : index
    %c0_42 = arith.constant 0 : index
    %c0_43 = arith.constant 0 : index
    %55 = vector.load %arg4[%c2_41, %c0_42, %c0_43] : memref<6x16x512xbf16, #tpu.memory_space<vmem>>, vector<1x16x512xbf16>
    %56 = vector.shape_cast %55 : vector<1x16x512xbf16> to vector<16x512xbf16>
    %cst_44 = arith.constant dense<0.000000e+00> : vector<2x16xf32>
    %57 = tpu.matmul %54, %56, %cst_44 {dimension_numbers = #tpu.dot_dimension_numbers<[1], [1], [0], [0], [0, 0, 1, 0], [], []>} : vector<2x512xbf16>, vector<16x512xbf16>, vector<2x16xf32> -> vector<2x16xf32>
    %c2_45 = arith.constant 2 : index
    %c0_46 = arith.constant 0 : index
    %c0_47 = arith.constant 0 : index
    %58 = vector.load %arg5[%c2_45, %c0_46, %c0_47] : memref<6x1x16xf32, #tpu.memory_space<vmem>>, vector<1x1x16xf32>
    %59 = vector.shape_cast %58 : vector<1x1x16xf32> to vector<1x16xf32>
    %60 = vector.broadcast %59 : vector<1x16xf32> to vector<2x16xf32>
    %61 = arith.addf %57, %60 : vector<2x16xf32>
    %62 = arith.negf %61 : vector<2x16xf32>
    %63 = math.exp %62 : vector<2x16xf32>
    %cst_48 = arith.constant 1.000000e+00 : f32
    %64 = vector.broadcast %cst_48 : f32 to vector<2x16xf32>
    %65 = arith.addf %64, %63 : vector<2x16xf32>
    %66 = arith.divf %64, %65 : vector<2x16xf32>
    %c2_49 = arith.constant 2 : index
    %c0_50 = arith.constant 0 : index
    %c0_51 = arith.constant 0 : index
    %67 = vector.load %arg6[%c2_49, %c0_50, %c0_51] : memref<6x2x16xf32, #tpu.memory_space<vmem>>, vector<1x2x16xf32>
    %68 = vector.shape_cast %67 : vector<1x2x16xf32> to vector<2x16xf32>
    %69 = vector.shape_cast %66 : vector<2x16xf32> to vector<1x2x16xf32>
    tpu.vector_store %arg6[%c2_49, %c0_50, %c0_51], %69 {strides = array<i32>} : memref<6x2x16xf32, #tpu.memory_space<vmem>>, vector<1x2x16xf32>,
    %c3 = arith.constant 3 : index
    %c0_52 = arith.constant 0 : index
    %c0_53 = arith.constant 0 : index
    %70 = vector.load %arg2[%c3, %c0_52, %c0_53] : memref<6x128x512xbf16, #tpu.memory_space<vmem>>, vector<1x128x512xbf16>
    %71 = vector.shape_cast %70 : vector<1x128x512xbf16> to vector<128x512xbf16>
    %cst_54 = arith.constant dense<0.000000e+00> : vector<2x512xf32>
    %72 = tpu.matmul %0, %71, %cst_54 {dimension_numbers = #tpu.dot_dimension_numbers<[1], [0], [0], [1], [0, 0, 1, 1], [], []>} : vector<2x128xbf16>, vector<128x512xbf16>, vector<2x512xf32> -> vector<2x512xf32>
    %c3_55 = arith.constant 3 : index
    %c0_56 = arith.constant 0 : index
    %c0_57 = arith.constant 0 : index
    %73 = vector.load %arg3[%c3_55, %c0_56, %c0_57] : memref<6x1x512xf32, #tpu.memory_space<vmem>>, vector<1x1x512xf32>
    %74 = vector.shape_cast %73 : vector<1x1x512xf32> to vector<1x512xf32>
    %75 = vector.broadcast %74 : vector<1x512xf32> to vector<2x512xf32>
    %76 = arith.addf %72, %75 : vector<2x512xf32>
    %77 = arith.truncf %76 : vector<2x512xf32> to vector<2x512xbf16>
    %c3_58 = arith.constant 3 : index
    %c0_59 = arith.constant 0 : index
    %c0_60 = arith.constant 0 : index
    %78 = vector.load %arg4[%c3_58, %c0_59, %c0_60] : memref<6x16x512xbf16, #tpu.memory_space<vmem>>, vector<1x16x512xbf16>
    %79 = vector.shape_cast %78 : vector<1x16x512xbf16> to vector<16x512xbf16>
    %cst_61 = arith.constant dense<0.000000e+00> : vector<2x16xf32>
    %80 = tpu.matmul %77, %79, %cst_61 {dimension_numbers = #tpu.dot_dimension_numbers<[1], [1], [0], [0], [0, 0, 1, 0], [], []>} : vector<2x512xbf16>, vector<16x512xbf16>, vector<2x16xf32> -> vector<2x16xf32>
    %c3_62 = arith.constant 3 : index
    %c0_63 = arith.constant 0 : index
    %c0_64 = arith.constant 0 : index
    %81 = vector.load %arg5[%c3_62, %c0_63, %c0_64] : memref<6x1x16xf32, #tpu.memory_space<vmem>>, vector<1x1x16xf32>
    %82 = vector.shape_cast %81 : vector<1x1x16xf32> to vector<1x16xf32>
    %83 = vector.broadcast %82 : vector<1x16xf32> to vector<2x16xf32>
    %84 = arith.addf %80, %83 : vector<2x16xf32>
    %85 = arith.negf %84 : vector<2x16xf32>
    %86 = math.exp %85 : vector<2x16xf32>
    %cst_65 = arith.constant 1.000000e+00 : f32
    %87 = vector.broadcast %cst_65 : f32 to vector<2x16xf32>
    %88 = arith.addf %87, %86 : vector<2x16xf32>
    %89 = arith.divf %87, %88 : vector<2x16xf32>
    %c3_66 = arith.constant 3 : index
    %c0_67 = arith.constant 0 : index
    %c0_68 = arith.constant 0 : index
    %90 = vector.load %arg6[%c3_66, %c0_67, %c0_68] : memref<6x2x16xf32, #tpu.memory_space<vmem>>, vector<1x2x16xf32>
    %91 = vector.shape_cast %90 : vector<1x2x16xf32> to vector<2x16xf32>
    %92 = vector.shape_cast %89 : vector<2x16xf32> to vector<1x2x16xf32>
    tpu.vector_store %arg6[%c3_66, %c0_67, %c0_68], %92 {strides = array<i32>} : memref<6x2x16xf32, #tpu.memory_space<vmem>>, vector<1x2x16xf32>,
    %c4 = arith.constant 4 : index
    %c0_69 = arith.constant 0 : index
    %c0_70 = arith.constant 0 : index
    %93 = vector.load %arg2[%c4, %c0_69, %c0_70] : memref<6x128x512xbf16, #tpu.memory_space<vmem>>, vector<1x128x512xbf16>
    %94 = vector.shape_cast %93 : vector<1x128x512xbf16> to vector<128x512xbf16>
    %cst_71 = arith.constant dense<0.000000e+00> : vector<2x512xf32>
    %95 = tpu.matmul %0, %94, %cst_71 {dimension_numbers = #tpu.dot_dimension_numbers<[1], [0], [0], [1], [0, 0, 1, 1], [], []>} : vector<2x128xbf16>, vector<128x512xbf16>, vector<2x512xf32> -> vector<2x512xf32>
    %c4_72 = arith.constant 4 : index
    %c0_73 = arith.constant 0 : index
    %c0_74 = arith.constant 0 : index
    %96 = vector.load %arg3[%c4_72, %c0_73, %c0_74] : memref<6x1x512xf32, #tpu.memory_space<vmem>>, vector<1x1x512xf32>
    %97 = vector.shape_cast %96 : vector<1x1x512xf32> to vector<1x512xf32>
    %98 = vector.broadcast %97 : vector<1x512xf32> to vector<2x512xf32>
    %99 = arith.addf %95, %98 : vector<2x512xf32>
    %100 = arith.truncf %99 : vector<2x512xf32> to vector<2x512xbf16>
    %c4_75 = arith.constant 4 : index
    %c0_76 = arith.constant 0 : index
    %c0_77 = arith.constant 0 : index
    %101 = vector.load %arg4[%c4_75, %c0_76, %c0_77] : memref<6x16x512xbf16, #tpu.memory_space<vmem>>, vector<1x16x512xbf16>
    %102 = vector.shape_cast %101 : vector<1x16x512xbf16> to vector<16x512xbf16>
    %cst_78 = arith.constant dense<0.000000e+00> : vector<2x16xf32>
    %103 = tpu.matmul %100, %102, %cst_78 {dimension_numbers = #tpu.dot_dimension_numbers<[1], [1], [0], [0], [0, 0, 1, 0], [], []>} : vector<2x512xbf16>, vector<16x512xbf16>, vector<2x16xf32> -> vector<2x16xf32>
    %c4_79 = arith.constant 4 : index
    %c0_80 = arith.constant 0 : index
    %c0_81 = arith.constant 0 : index
    %104 = vector.load %arg5[%c4_79, %c0_80, %c0_81] : memref<6x1x16xf32, #tpu.memory_space<vmem>>, vector<1x1x16xf32>
    %105 = vector.shape_cast %104 : vector<1x1x16xf32> to vector<1x16xf32>
    %106 = vector.broadcast %105 : vector<1x16xf32> to vector<2x16xf32>
    %107 = arith.addf %103, %106 : vector<2x16xf32>
    %108 = arith.negf %107 : vector<2x16xf32>
    %109 = math.exp %108 : vector<2x16xf32>
    %cst_82 = arith.constant 1.000000e+00 : f32
    %110 = vector.broadcast %cst_82 : f32 to vector<2x16xf32>
    %111 = arith.addf %110, %109 : vector<2x16xf32>
    %112 = arith.divf %110, %111 : vector<2x16xf32>
    %c4_83 = arith.constant 4 : index
    %c0_84 = arith.constant 0 : index
    %c0_85 = arith.constant 0 : index
    %113 = vector.load %arg6[%c4_83, %c0_84, %c0_85] : memref<6x2x16xf32, #tpu.memory_space<vmem>>, vector<1x2x16xf32>
    %114 = vector.shape_cast %113 : vector<1x2x16xf32> to vector<2x16xf32>
    %115 = vector.shape_cast %112 : vector<2x16xf32> to vector<1x2x16xf32>
    tpu.vector_store %arg6[%c4_83, %c0_84, %c0_85], %115 {strides = array<i32>} : memref<6x2x16xf32, #tpu.memory_space<vmem>>, vector<1x2x16xf32>,
    %c5 = arith.constant 5 : index
    %c0_86 = arith.constant 0 : index
    %c0_87 = arith.constant 0 : index
    %116 = vector.load %arg2[%c5, %c0_86, %c0_87] : memref<6x128x512xbf16, #tpu.memory_space<vmem>>, vector<1x128x512xbf16>
    %117 = vector.shape_cast %116 : vector<1x128x512xbf16> to vector<128x512xbf16>
    %cst_88 = arith.constant dense<0.000000e+00> : vector<2x512xf32>
    %118 = tpu.matmul %0, %117, %cst_88 {dimension_numbers = #tpu.dot_dimension_numbers<[1], [0], [0], [1], [0, 0, 1, 1], [], []>} : vector<2x128xbf16>, vector<128x512xbf16>, vector<2x512xf32> -> vector<2x512xf32>
    %c5_89 = arith.constant 5 : index
    %c0_90 = arith.constant 0 : index
    %c0_91 = arith.constant 0 : index
    %119 = vector.load %arg3[%c5_89, %c0_90, %c0_91] : memref<6x1x512xf32, #tpu.memory_space<vmem>>, vector<1x1x512xf32>
    %120 = vector.shape_cast %119 : vector<1x1x512xf32> to vector<1x512xf32>
    %121 = vector.broadcast %120 : vector<1x512xf32> to vector<2x512xf32>
    %122 = arith.addf %118, %121 : vector<2x512xf32>
    %123 = arith.truncf %122 : vector<2x512xf32> to vector<2x512xbf16>
    %c5_92 = arith.constant 5 : index
    %c0_93 = arith.constant 0 : index
    %c0_94 = arith.constant 0 : index
    %124 = vector.load %arg4[%c5_92, %c0_93, %c0_94] : memref<6x16x512xbf16, #tpu.memory_space<vmem>>, vector<1x16x512xbf16>
    %125 = vector.shape_cast %124 : vector<1x16x512xbf16> to vector<16x512xbf16>
    %cst_95 = arith.constant dense<0.000000e+00> : vector<2x16xf32>
    %126 = tpu.matmul %123, %125, %cst_95 {dimension_numbers = #tpu.dot_dimension_numbers<[1], [1], [0], [0], [0, 0, 1, 0], [], []>} : vector<2x512xbf16>, vector<16x512xbf16>, vector<2x16xf32> -> vector<2x16xf32>
    %c5_96 = arith.constant 5 : index
    %c0_97 = arith.constant 0 : index
    %c0_98 = arith.constant 0 : index
    %127 = vector.load %arg5[%c5_96, %c0_97, %c0_98] : memref<6x1x16xf32, #tpu.memory_space<vmem>>, vector<1x1x16xf32>
    %128 = vector.shape_cast %127 : vector<1x1x16xf32> to vector<1x16xf32>
    %129 = vector.broadcast %128 : vector<1x16xf32> to vector<2x16xf32>
    %130 = arith.addf %126, %129 : vector<2x16xf32>
    %131 = arith.negf %130 : vector<2x16xf32>
    %132 = math.exp %131 : vector<2x16xf32>
    %cst_99 = arith.constant 1.000000e+00 : f32
    %133 = vector.broadcast %cst_99 : f32 to vector<2x16xf32>
    %134 = arith.addf %133, %132 : vector<2x16xf32>
    %135 = arith.divf %133, %134 : vector<2x16xf32>
    %c5_100 = arith.constant 5 : index
    %c0_101 = arith.constant 0 : index
    %c0_102 = arith.constant 0 : index
    %136 = vector.load %arg6[%c5_100, %c0_101, %c0_102] : memref<6x2x16xf32, #tpu.memory_space<vmem>>, vector<1x2x16xf32>
    %137 = vector.shape_cast %136 : vector<1x2x16xf32> to vector<2x16xf32>
    %138 = vector.shape_cast %135 : vector<2x16xf32> to vector<1x2x16xf32>
    tpu.vector_store %arg6[%c5_100, %c0_101, %c0_102], %138 {strides = array<i32>} : memref<6x2x16xf32, #tpu.memory_space<vmem>>, vector<1x2x16xf32>,
    return
  }
  func.func @transform_0(%arg0: i32) -> (i32, i32) {
    %c0_i32 = arith.constant 0 : i32
    %c0_i32_0 = arith.constant 0 : i32
    %c0_i32_1 = arith.constant 0 : i32
    return %c0_i32, %c0_i32_0 : i32, i32
  }
  func.func @transform_1(%arg0: i32) -> (i32, i32, i32) {
    %c0_i32 = arith.constant 0 : i32
    %c0_i32_0 = arith.constant 0 : i32
    %c0_i32_1 = arith.constant 0 : i32
    return %arg0, %c0_i32, %c0_i32_0 : i32, i32, i32
  }
  func.func @transform_2(%arg0: i32) -> (i32, i32, i32) {
    %c0_i32 = arith.constant 0 : i32
    %c0_i32_0 = arith.constant 0 : i32
    %c0_i32_1 = arith.constant 0 : i32
    return %arg0, %c0_i32, %c0_i32_0 : i32, i32, i32
  }
  func.func @transform_3(%arg0: i32) -> (i32, i32, i32) {
    %c0_i32 = arith.constant 0 : i32
    %c0_i32_0 = arith.constant 0 : i32
    %c0_i32_1 = arith.constant 0 : i32
    return %arg0, %c0_i32, %c0_i32_0 : i32, i32, i32
  }
  func.func @transform_4(%arg0: i32) -> (i32, i32, i32) {
    %c0_i32 = arith.constant 0 : i32
    %c0_i32_0 = arith.constant 0 : i32
    %c0_i32_1 = arith.constant 0 : i32
    return %arg0, %c0_i32, %c0_i32_0 : i32, i32, i32
  }
  func.func @transform_5(%arg0: i32) -> (i32, i32, i32) {
    %c0_i32 = arith.constant 0 : i32
    %c0_i32_0 = arith.constant 0 : i32
    %c0_i32_1 = arith.constant 0 : i32
    return %arg0, %c0_i32, %c0_i32_0 : i32, i32, i32
  }
}

module attributes {stable_mosaic.version = 11 : i64} {
  func.func @_extractor_kernel(%arg0: i32, %arg1: i32, %arg2: memref<1x32x256xbf16, #tpu.memory_space<vmem>>, %arg3: memref<32x128xbf16, #tpu.memory_space<vmem>>, %arg4: memref<1x128xf32, #tpu.memory_space<vmem>>, %arg5: memref<128x128xbf16, #tpu.memory_space<vmem>>, %arg6: memref<1x128xf32, #tpu.memory_space<vmem>>, %arg7: memref<1x1x128xbf16, #tpu.memory_space<vmem>>, %arg8: memref<1x128xf32, #tpu.memory_space<vmem>>) attributes {dimension_semantics = [#tpu.dimension_semantics<parallel>, #tpu.dimension_semantics<arbitrary>], iteration_bounds = array<i64: 2, 1>, scalar_prefetch = 0 : i64, scratch_operands = 1 : i64, tpu.core_type = #tpu.core_type<tc>, window_params = [{transform_indices = @transform_0, window_bounds = array<i64: 1, 32, 256>}, {pipeline_mode = #tpu.pipeline_mode<synchronous>, transform_indices = @transform_1, window_bounds = array<i64: 32, 128>}, {pipeline_mode = #tpu.pipeline_mode<synchronous>, transform_indices = @transform_2, window_bounds = array<i64: 1, 128>}, {pipeline_mode = #tpu.pipeline_mode<synchronous>, transform_indices = @transform_3, window_bounds = array<i64: 128, 128>}, {pipeline_mode = #tpu.pipeline_mode<synchronous>, transform_indices = @transform_4, window_bounds = array<i64: 1, 128>}, {transform_indices = @transform_5, window_bounds = array<i64: 1, 1, 128>}]} {
    %c0_i32 = arith.constant 0 : i32
    %0 = arith.cmpi eq, %arg1, %c0_i32 : i32
    %1 = arith.extui %0 : i1 to i32
    %c0_i32_0 = arith.constant 0 : i32
    %2 = arith.cmpi ne, %1, %c0_i32_0 : i32
    scf.if %2 {
      %cst_15 = arith.constant 0.000000e+00 : f32
      %20 = vector.broadcast %cst_15 : f32 to vector<1x128xf32>
      %c0_16 = arith.constant 0 : index
      %c0_17 = arith.constant 0 : index
      %21 = vector.load %arg8[%c0_16, %c0_17] : memref<1x128xf32, #tpu.memory_space<vmem>>, vector<1x128xf32>
      tpu.vector_store %arg8[%c0_16, %c0_17], %20 {strides = array<i32>} : memref<1x128xf32, #tpu.memory_space<vmem>>, vector<1x128xf32>,
    } else {
    }
    %c0 = arith.constant 0 : index
    %c0_1 = arith.constant 0 : index
    %c0_2 = arith.constant 0 : index
    %3 = vector.load %arg2[%c0, %c0_1, %c0_2] : memref<1x32x256xbf16, #tpu.memory_space<vmem>>, vector<1x32x256xbf16>
    %4 = vector.shape_cast %3 : vector<1x32x256xbf16> to vector<32x256xbf16>
    %c0_3 = arith.constant 0 : index
    %c0_4 = arith.constant 0 : index
    %5 = vector.load %arg3[%c0_3, %c0_4] : memref<32x128xbf16, #tpu.memory_space<vmem>>, vector<32x128xbf16>
    %cst = arith.constant dense<0.000000e+00> : vector<256x128xf32>
    %6 = tpu.matmul %4, %5, %cst {dimension_numbers = #tpu.dot_dimension_numbers<[0], [0], [1], [1], [0, 1, 1, 1], [], []>} : vector<32x256xbf16>, vector<32x128xbf16>, vector<256x128xf32> -> vector<256x128xf32>
    %c0_5 = arith.constant 0 : index
    %c0_6 = arith.constant 0 : index
    %7 = vector.load %arg4[%c0_5, %c0_6] : memref<1x128xf32, #tpu.memory_space<vmem>>, vector<1x128xf32>
    %8 = vector.broadcast %7 : vector<1x128xf32> to vector<256x128xf32>
    %9 = arith.addf %6, %8 : vector<256x128xf32>
    %cst_7 = arith.constant 0.000000e+00 : f32
    %10 = vector.broadcast %cst_7 : f32 to vector<256x128xf32>
    %11 = arith.maximumf %9, %10 : vector<256x128xf32>
    %c0_8 = arith.constant 0 : index
    %c0_9 = arith.constant 0 : index
    %12 = vector.load %arg8[%c0_8, %c0_9] : memref<1x128xf32, #tpu.memory_space<vmem>>, vector<1x128xf32>
    %cst_10 = arith.constant dense<0.000000e+00> : vector<128xf32>
    %13 = vector.multi_reduction <add>, %11, %cst_10 [0] : vector<256x128xf32> to vector<128xf32>
    %14 = vector.shape_cast %13 : vector<128xf32> to vector<1x128xf32>
    %15 = arith.addf %12, %14 : vector<1x128xf32>
    %c0_11 = arith.constant 0 : index
    %c0_12 = arith.constant 0 : index
    %16 = vector.load %arg8[%c0_11, %c0_12] : memref<1x128xf32, #tpu.memory_space<vmem>>, vector<1x128xf32>
    tpu.vector_store %arg8[%c0_11, %c0_12], %15 {strides = array<i32>} : memref<1x128xf32, #tpu.memory_space<vmem>>, vector<1x128xf32>,
    %c0_i32_13 = arith.constant 0 : i32
    %17 = arith.cmpi eq, %arg1, %c0_i32_13 : i32
    %18 = arith.extui %17 : i1 to i32
    %c0_i32_14 = arith.constant 0 : i32
    %19 = arith.cmpi ne, %18, %c0_i32_14 : i32
    scf.if %19 {
      %c0_15 = arith.constant 0 : index
      %c0_16 = arith.constant 0 : index
      %20 = vector.load %arg8[%c0_15, %c0_16] : memref<1x128xf32, #tpu.memory_space<vmem>>, vector<1x128xf32>
      %cst_17 = arith.constant 3.906250e-03 : f32
      %21 = vector.broadcast %cst_17 : f32 to vector<1x128xf32>
      %22 = arith.mulf %20, %21 : vector<1x128xf32>
      %23 = arith.truncf %22 : vector<1x128xf32> to vector<1x128xbf16>
      %c0_18 = arith.constant 0 : index
      %c0_19 = arith.constant 0 : index
      %24 = vector.load %arg5[%c0_18, %c0_19] : memref<128x128xbf16, #tpu.memory_space<vmem>>, vector<128x128xbf16>
      %cst_20 = arith.constant dense<0.000000e+00> : vector<1x128xf32>
      %25 = tpu.matmul %23, %24, %cst_20 {dimension_numbers = #tpu.dot_dimension_numbers<[1], [0], [0], [1], [0, 0, 1, 1], [], []>} : vector<1x128xbf16>, vector<128x128xbf16>, vector<1x128xf32> -> vector<1x128xf32>
      %c0_21 = arith.constant 0 : index
      %c0_22 = arith.constant 0 : index
      %26 = vector.load %arg6[%c0_21, %c0_22] : memref<1x128xf32, #tpu.memory_space<vmem>>, vector<1x128xf32>
      %27 = arith.addf %25, %26 : vector<1x128xf32>
      %28 = arith.truncf %27 : vector<1x128xf32> to vector<1x128xbf16>
      %c0_23 = arith.constant 0 : index
      %c0_24 = arith.constant 0 : index
      %c0_25 = arith.constant 0 : index
      %29 = vector.load %arg7[%c0_23, %c0_24, %c0_25] : memref<1x1x128xbf16, #tpu.memory_space<vmem>>, vector<1x1x128xbf16>
      %30 = vector.shape_cast %29 : vector<1x1x128xbf16> to vector<1x128xbf16>
      %31 = vector.shape_cast %28 : vector<1x128xbf16> to vector<1x1x128xbf16>
      tpu.vector_store %arg7[%c0_23, %c0_24, %c0_25], %31 {strides = array<i32>} : memref<1x1x128xbf16, #tpu.memory_space<vmem>>, vector<1x1x128xbf16>,
    } else {
    }
    return
  }
  func.func @transform_0(%arg0: i32, %arg1: i32) -> (i32, i32, i32) {
    %c0_i32 = arith.constant 0 : i32
    %c0_i32_0 = arith.constant 0 : i32
    return %arg0, %c0_i32, %arg1 : i32, i32, i32
  }
  func.func @transform_1(%arg0: i32, %arg1: i32) -> (i32, i32) {
    %c0_i32 = arith.constant 0 : i32
    %c0_i32_0 = arith.constant 0 : i32
    %c0_i32_1 = arith.constant 0 : i32
    return %c0_i32, %c0_i32_0 : i32, i32
  }
  func.func @transform_2(%arg0: i32, %arg1: i32) -> (i32, i32) {
    %c0_i32 = arith.constant 0 : i32
    %c0_i32_0 = arith.constant 0 : i32
    %c0_i32_1 = arith.constant 0 : i32
    return %c0_i32, %c0_i32_0 : i32, i32
  }
  func.func @transform_3(%arg0: i32, %arg1: i32) -> (i32, i32) {
    %c0_i32 = arith.constant 0 : i32
    %c0_i32_0 = arith.constant 0 : i32
    %c0_i32_1 = arith.constant 0 : i32
    return %c0_i32, %c0_i32_0 : i32, i32
  }
  func.func @transform_4(%arg0: i32, %arg1: i32) -> (i32, i32) {
    %c0_i32 = arith.constant 0 : i32
    %c0_i32_0 = arith.constant 0 : i32
    %c0_i32_1 = arith.constant 0 : i32
    return %c0_i32, %c0_i32_0 : i32, i32
  }
  func.func @transform_5(%arg0: i32, %arg1: i32) -> (i32, i32, i32) {
    %c0_i32 = arith.constant 0 : i32
    %c0_i32_0 = arith.constant 0 : i32
    %c0_i32_1 = arith.constant 0 : i32
    return %arg0, %c0_i32, %c0_i32_0 : i32, i32, i32
  }
}

</mosaic_0001>

<bundles_post_ra>
// kernel: mainnet_forward.2
= control target key start
LH: loop header
LB: loop body
LE: loop exit
PB: predicated region body
PF: predicated region fallthrough
CT: control target
= control target key end

     0   :  { %10 = vsyncpa [#allocation4], 0  ;;  %s1509_s0 = inlined_call_operand.vmem [shape: bf16[2,32,256], index: 0, kind: input, shape index: {}]   ;;  %s1510_s1 = inlined_call_operand.hbm [shape: bf16[32,128], index: 1, kind: input, shape index: {}]   ;;  %s1511_s2 = inlined_call_operand.hbm [shape: f32[1,128], index: 2, kind: input, shape index: {}]   ;;  %s1512_s3 = inlined_call_operand.hbm [shape: bf16[128,128], index: 3, kind: input, shape index: {}]   ;;  %s1513_s4 = inlined_call_operand.hbm [shape: f32[1,128], index: 4, kind: input, shape index: {}]   ;;  %s1514_s5 = inlined_call_operand.vmem [shape: bf16[2,1,128], index: 5, kind: output, shape index: {}]  }
   0x1   :  { %11 = vsyncpa [#allocation6], 0 }
   0x2   :  { %12 = vsyncpa [#allocation9], 0  ;;  %s1296_s18 = smov 0   ;;  %s1298_s19 = smov 0  }
   0x3   :  { %s1300_s20 = smov 0  }
   0x4 LB: > { %s1258_s21 = smov [#allocation5]   ;;  %s892_s23 = sadd.s32 4294967295, %s1256_s20   ;;  %s1256_s20 = sphi %s1300_s20, %s18_s20   ;;  %s1252_s19 = sphi %s1298_s19, %s1527_s19   ;;  %s1248_s18 = sphi %s1296_s18, %s1526_s18  }
   0x5   : > { %s199_s22 = sshll.u32 %s1258_s21, 4  ;;  %p894_p0 = scmp.ge.s32.totalorder %s1256_s20, 1  ;;  %s200_s22 = int_to_ptr.vmem [resolvable:$true] %s199_s22 }
   0x6   : > { %p173_p1 = scmp.lt.s32.totalorder %s1256_s20, 3  ;;  %p1314_p2 = scmp.eq.s32.totalorder %s892_s23, 0 }
   0x7   : > { %s30_s26 = sadd.s32 1, %s1252_s19  ;;  %s1259_s29 = smov [#allocation3]  }
   0x8   : > { %s1518_s24 = scalar_select %p1314_p2, 1, 0 }
   0x9   : > { %p1318_p3 = pnand %p894_p0, %p173_p1  ;;  %p1331_p6 = scmp.ge.s32.totalorder %s30_s26, 2 }
   0xa   : > { %s185_s30 = sshll.u32 %s1259_s29, 4  ;;  %s1110_s8 = scalar_lea.hbm %s1511_s2, 16  ;;  %s1335_s30 = int_to_ptr.vmem [resolvable:$true] %s185_s30 }
   0xb   : > { %s1519_s25 = scalar_select %p1318_p3, 1, 0 }
   0xc   : > { %p1040_p4 = pneg %p1318_p3  ;;  %p1111_p7 = scmp.ne.s32.totalorder %s1511_s2, %s1110_s8 }
   0xd   : > { %s1521_s28 = scalar_select %p1331_p6, 1, 0 }
   0xe   : > { %p1327_p5 = pnand %p1314_p2, %p1040_p4  ;;  %p1117_p11 = scmp.lt.u32.totalorder %s1110_s8, %s1511_s2 }
  0x10   : > { %p1345_p8 = pneg %p1327_p5 }
  0x12   : > { %p1113_p9 = pnand %p1345_p8, %p1111_p7 }
  0x14   : > { %p1114_p10 = pneg %p1113_p9 }
  0x16   : > { %p1119_p12 = pnand %p1117_p11, %p1114_p10 }
  0x18   : > { %1122 = shalt.err (!%p1119_p12)
}
  0x19   : > { %s1123_s14 = scalar_lea.vmem %s200_s22, 16  ;;  %s1130_s15 = scalar_lea.vmem %s200_s22, 32 }
  0x1a   : > { %p1124_p13 = scmp.ne.s32.totalorder %s200_s22, %s1123_s14  ;;  %p1131_p4 = scmp.lt.s32.totalorder %s200_s22, %s200_s22 }
  0x1b   : > { %p1132_p2 = scmp.lt.s32.totalorder %s1130_s15, %s1123_s14 }
  0x1c   : > { %p1126_p0 = pnand %p1124_p13, %p1345_p8 }
  0x1d   : > { %p1133_p3 = por %p1132_p2, %p1131_p4 }
  0x1e   : > { %p1127_p1 = pneg %p1126_p0 }
  0x20   : > { %p1134_p6 = pnand %p1133_p3, %p1127_p1 }
  0x22   : > { %1137 = shalt.err (!%p1134_p6)
}
  0x23   : > { %1046 = dma.hbm_to_vmem [thread:$0]  (!%p1327_p5), %s1511_s2, 16, %s200_s22, [#allocation6]  }
  0x24   : > { %p1523_p7 = scmp.ne.s32.totalorder %s1521_s28, 0  ;;  %s1138_s29 = scalar_lea.hbm %s1510_s1, 256 }
  0x25   : > { %p1139_p2 = scmp.ne.s32.totalorder %s1510_s1, %s1138_s29  ;;  %p1145_p9 = scmp.lt.u32.totalorder %s1138_s29, %s1510_s1 }
  0x26   : > { %s1529_s26 = smov (%p1523_p7, %s30_s26), 0 }
  0x27   : > { %p1141_p3 = pnand %p1139_p2, %p1345_p8 }
  0x29   : > { %p1142_p6 = pneg %p1141_p3 }
  0x2b   : > { %p1147_p10 = pnand %p1145_p9, %p1142_p6 }
  0x2d   : > { %1150 = shalt.err (!%p1147_p10)
}
  0x2e   : > { %s1151_s22 = scalar_lea.vmem %s1335_s30, 256  ;;  %p1159_p0 = scmp.lt.s32.totalorder %s1335_s30, %s1335_s30 }
  0x2f   : > { %p1152_p11 = scmp.ne.s32.totalorder %s1335_s30, %s1151_s22  ;;  %p1160_p1 = scmp.lt.s32.totalorder %s1151_s22, %s1151_s22 }
  0x31   : > { %p1154_p12 = pnand %p1152_p11, %p1345_p8  ;;  %p1161_p4 = por %p1160_p1, %p1159_p0 }
  0x33   : > { %p1155_p13 = pneg %p1154_p12 }
  0x35   : > { %p1162_p7 = pnand %p1161_p4, %p1155_p13 }
  0x37   : > { %1165 = shalt.err (!%p1162_p7)
}
  0x38   : > { %s1260_s28 = smov 64   ;;  %s1261_s10 = smov 4  }
  0x39   : > { %1043 = dma.hbm_to_vmem [thread:$0]  (!%p1327_p5), %s1510_s1, 256, %s1335_s30, [#allocation4], %s1260_s28, %s1260_s28, %s1261_s10  }
  0x3a   : > { %s1262_s14 = smov [#allocation7]   ;;  %s1263_s16 = smov [#allocation8]  }
  0x3b   : > { %s209_s15 = sshll.u32 %s1262_s14, 4  ;;  %s223_s17 = sshll.u32 %s1263_s16, 4  ;;  %s210_s15 = int_to_ptr.vmem [resolvable:$true] %s209_s15  ;;  %s224_s17 = int_to_ptr.vmem [resolvable:$true] %s223_s17 }
  0x3c   : > { %s1166_s29 = scalar_lea.hbm %s1512_s3, 1024 }
  0x3d   : > { %p1167_p2 = scmp.ne.s32.totalorder %s1512_s3, %s1166_s29  ;;  %p1173_p9 = scmp.lt.u32.totalorder %s1166_s29, %s1512_s3 }
  0x3f   : > { %p1169_p3 = pnand %p1167_p2, %p1345_p8 }
  0x41   : > { %p1170_p6 = pneg %p1169_p3 }
  0x43   : > { %p1175_p10 = pnand %p1173_p9, %p1170_p6 }
  0x45   : > { %1178 = shalt.err (!%p1175_p10)
}
  0x46   : > { %s1179_s30 = scalar_lea.vmem %s210_s15, 1024  ;;  %p1187_p0 = scmp.lt.s32.totalorder %s210_s15, %s210_s15 }
  0x47   : > { %p1180_p11 = scmp.ne.s32.totalorder %s210_s15, %s1179_s30  ;;  %p1188_p1 = scmp.lt.s32.totalorder %s1179_s30, %s1179_s30 }
  0x49   : > { %p1182_p12 = pnand %p1180_p11, %p1345_p8  ;;  %p1189_p4 = por %p1188_p1, %p1187_p0 }
  0x4b   : > { %p1183_p13 = pneg %p1182_p12 }
  0x4d   : > { %p1190_p7 = pnand %p1189_p4, %p1183_p13 }
  0x4f   : > { %1193 = shalt.err (!%p1190_p7)
}
  0x50   : > { %1049 = dma.hbm_to_vmem [thread:$0]  (!%p1327_p5), %s1512_s3, 1024, %s210_s15, [#allocation6], %s1260_s28, %s1260_s28, %s1261_s10  }
  0x51   : > { %s1194_s16 = scalar_lea.hbm %s1513_s4, 16 }
  0x52   : > { %p1195_p2 = scmp.ne.s32.totalorder %s1513_s4, %s1194_s16  ;;  %p1201_p9 = scmp.lt.u32.totalorder %s1194_s16, %s1513_s4 }
  0x54   : > { %p1197_p3 = pnand %p1195_p2, %p1345_p8 }
  0x56   : > { %p1198_p6 = pneg %p1197_p3 }
  0x58   : > { %p1203_p10 = pnand %p1201_p9, %p1198_p6 }
  0x5a   : > { %1206 = shalt.err (!%p1203_p10)
}
  0x5b   : > { %s1207_s7 = scalar_lea.vmem %s224_s17, 16  ;;  %s1214_s28 = scalar_lea.vmem %s224_s17, 32 }
  0x5c   : > { %p1208_p11 = scmp.ne.s32.totalorder %s224_s17, %s1207_s7  ;;  %p1215_p0 = scmp.lt.s32.totalorder %s224_s17, %s224_s17 }
  0x5d   : > { %p1216_p1 = scmp.lt.s32.totalorder %s1214_s28, %s1207_s7 }
  0x5e   : > { %p1210_p12 = pnand %p1208_p11, %p1345_p8 }
  0x5f   : > { %p1217_p4 = por %p1216_p1, %p1215_p0 }
  0x60   : > { %p1211_p13 = pneg %p1210_p12 }
  0x62   : > { %p1218_p7 = pnand %p1217_p4, %p1211_p13 }
  0x64   : > { %1221 = shalt.err (!%p1218_p7)
}
  0x65   : > { %1052 = dma.hbm_to_vmem [thread:$0]  (!%p1327_p5), %s1513_s4, 16, %s224_s17, [#allocation9]  }
  0x66   : > { %p1524_p2 = scmp.ne.s32.totalorder %s1519_s25, 0 }
  0x67   : > { %p1525_p3 = scmp.ne.s32.totalorder (!%p1524_p2), %s1518_s24, 0 }
  0x68   : > { %249 = sbr.rel (%p1524_p2) target bundleno = 754 (0x2f2), region = 40 }
  0x6f   : > { %1235 = dma.done.wait (%p1525_p3), [#allocation4], 256  }
  0x70   : > { %1237 = vsyncadd (%p1525_p3), [#allocation4], 4294967040 }
  0x71   : > { %1239 = dma.done.wait (%p1525_p3), [#allocation6], 1040  }
  0x72   : > { %1241 = vsyncadd (%p1525_p3), [#allocation6], 4294966256 }
  0x73   : > { %1243 = dma.done.wait (%p1525_p3), [#allocation9], 16  }
  0x74   : > { %1245 = vsyncadd (%p1525_p3), [#allocation9], 4294967280  ;;  %p292_p5 = scmp.lt.s32.totalorder %s1248_s18, 1  ;;  %v1100_v4 = vld [vmem:[#allocation3] sm:$0xff]   ;;  %v1101_v5 = vld [vmem:[#allocation3 + $0x8] sm:$0xff]   ;;  %vm389_vm0 = vcmask 261120  }
  0x75   : > { %968 = vmatprep.subr.bf16.mxu0 %v1100_v4  ;;  %v1264_v22 = vmov 0.0   ;;  %v1102_v23 = vld [vmem:[#allocation7] sm:$0xff]   ;;  %v1103_v24 = vld [vmem:[#allocation7 + $0x8] sm:$0xff]   ;;  %v1104_v25 = vld [vmem:[#allocation7 + $0x10] sm:$0xff]   ;;  %vm1265_vm1 = vmmov 0   ;;  %vm783_vm2 = vcmask 1040384  }
  0x76   : > { %s1531_s18 = smov (!%p292_p5, %s1248_s18), 1  ;;  %969 = vmatpush3.bf16.msra.mxu0 %v1100_v4  ;;  %309 = vst [vmem:[#allocation2] sm:$0x1] %v1264_v22  ;;  %1004 = vmatprep.subr.bf16.mxu1 %v1264_v22  ;;  %v1105_v26 = vld [vmem:[#allocation7 + $0x18] sm:$0xff]   ;;  %v1106_v27 = vld [vmem:[#allocation7 + $0x20] sm:$0xff]   ;;  %v1107_v28 = vld [vmem:[#allocation7 + $0x28] sm:$0xff]  }
  0x77   : > { %s940_s25 = sshll.u32 %s1531_s18, 5  ;;  %970 = vmatprep.subr.bf16.mxu0 %v1101_v5  ;;  %1005 = vmatpush3.bf16.msra.mxu1 %v1102_v23  ;;  %v1108_v29 = vld [vmem:[#allocation7 + $0x30] sm:$0xff]   ;;  %v1109_v30 = vld [vmem:[#allocation7 + $0x38] sm:$0xff]   ;;  %s303_s9 = scalar_lea.vmem %s1514_s5, %s1531_s18  ;;  %vm784_vm3 = vsmask.f32 256 }
  0x78   : > { %s299_s17 = scalar_lea.vmem %s1509_s0, %s940_s25  ;;  %1006 = vmatprep.subr.bf16.mxu1 %v1264_v22  ;;  %1020 = vmatprep.mubr.msk.bf16.mxu1 %vm1265_vm1, %v1264_v22  ;;  %v1462_v31 = vld [vmem:[#allocation5] ss:$0 sm:$0xff]  ;;  %vm785_vm4 = vmand %vm783_vm2, %vm784_vm3 }
  0x79   : > { %v1094_v0 = vld [vmem:[%s299_s17] ss:$8 sps:$4 sm:$0xff]   ;;  %v1096_v1 = vld [vmem:[%s299_s17 + $0x10] ss:$8 sps:$4 sm:$0xff]   ;;  %v1098_v2 = vld [vmem:[%s299_s17 + $0x4] ss:$8 sps:$4 sm:$0xff]  }
  0x7a   : > { %345 = vxpose.xlu0.c.b16.start [1/2] (short) %v1094_v0, 128  ;;  %v1099_v3 = vld [vmem:[%s299_s17 + $0x14] ss:$8 sps:$4 sm:$0xff]   ;;  %361 = vxpose.xlu1.c.b16.start [1/2] (short) %v1098_v2, 128 }
  0x7b   : > { %971 = vmatpush3.bf16.msra.mxu0 %v1101_v5  ;;  %1007 = vmatpush3.bf16.msra.mxu1 %v1103_v24 }
  0x7c   : > { %1008 = vmatprep.subr.bf16.mxu1 %v1264_v22 }
  0x7e   : > { %346 = vxpose.xlu0.c.b16.end [2/2] (short) %v1096_v1, 128  ;;  %362 = vxpose.xlu1.c.b16.end [2/2] (short) %v1099_v3, 128 }
  0x7f   : > { %1009 = vmatpush3.bf16.msra.mxu1 %v1104_v25 }
  0x80   : > { %1010 = vmatprep.subr.bf16.mxu1 %v1264_v22 }
  0x83   : > { %1011 = vmatpush3.bf16.msra.mxu1 %v1105_v26 }
  0x84   : > { %1012 = vmatprep.subr.bf16.mxu1 %v1264_v22 }
  0x87   : > { %1013 = vmatpush3.bf16.msra.mxu1 %v1106_v27 }
  0x88   : > { %1014 = vmatprep.subr.bf16.mxu1 %v1264_v22 }
  0x8b   : > { %1015 = vmatpush3.bf16.msra.mxu1 %v1107_v28 }
  0x8c   : > { %1016 = vmatprep.subr.bf16.mxu1 %v1264_v22 }
  0x8f   : > { %1017 = vmatpush3.bf16.msra.mxu1 %v1108_v29 }
  0x90   : > { %1018 = vmatprep.subr.bf16.mxu1 %v1264_v22 }
  0x93   : > { %1019 = vmatpush3.bf16.msra.mxu1 %v1109_v30 }
  0xe0   : > { %v353_v6 = vpop.trf.xlu0  ;;  %v369_v10 = vpop.trf.xlu1 }
  0xe1   : > { %972 = vmatprep.mubr.msk.bf16.mxu0 %vm389_vm0, %v353_v6 }
  0xe4   : > { %v354_v7 = vpop.trf.xlu0  ;;  %v370_v13 = vpop.trf.xlu1 }
  0xe5   : > { %973 = vmatmul.mubr.msk.bf16.vlgmr.msra.gmra.mrb[0].mxu0 %vm389_vm0, %v354_v7 }
  0xe8   : > { %v355_v8 = vpop.trf.xlu0  ;;  %v371_v15 = vpop.trf.xlu1 }
  0xe9   : > { %976 = vmatprep.mubr.msk.bf16.mxu0 %vm389_vm0, %v355_v8 }
  0xec   : > { %v356_v9 = vpop.trf.xlu0  ;;  %v372_v17 = vpop.trf.xlu1 }
  0xed   : > { %977 = vmatmul.mubr.msk.bf16.gmra.mrb[4].mxu0 %vm389_vm0, %v356_v9 }
  0xf0   : > { %v357_v11 = vpop.trf.xlu0  ;;  %v373_v18 = vpop.trf.xlu1 }
  0xf1   : > { %980 = vmatprep.mubr.msk.bf16.mxu0 %vm389_vm0, %v357_v11 }
  0xf4   : > { %v358_v12 = vpop.trf.xlu0  ;;  %v374_v19 = vpop.trf.xlu1 }
  0xf5   : > { %981 = vmatmul.mubr.msk.bf16.gmra.mrb[8].mxu0 %vm389_vm0, %v358_v12 }
  0xf8   : > { %v359_v14 = vpop.trf.xlu0  ;;  %v375_v20 = vpop.trf.xlu1 }
  0xf9   : > { %984 = vmatprep.mubr.msk.bf16.mxu0 %vm389_vm0, %v359_v14 }
  0xfc   : > { %v360_v16 = vpop.trf.xlu0  ;;  %v376_v21 = vpop.trf.xlu1 }
  0xfd   : > { %985 = vmatmul.mubr.msk.bf16.gmra.mrb[12].mxu0 %vm389_vm0, %v360_v16 }
  0xfe   : > { %988 = vmatprep.mubr.msk.bf16.mxu0 %vm389_vm0, %v369_v10 }
 0x105   : > { %989 = vmatmul.mubr.msk.bf16.gmra.mrb[16].mxu0 %vm389_vm0, %v370_v13 }
 0x106   : > { %992 = vmatprep.mubr.msk.bf16.mxu0 %vm389_vm0, %v371_v15 }
 0x10d   : > { %993 = vmatmul.mubr.msk.bf16.gmra.mrb[20].mxu0 %vm389_vm0, %v372_v17 }
 0x10e   : > { %996 = vmatprep.mubr.msk.bf16.mxu0 %vm389_vm0, %v373_v18 }
 0x115   : > { %997 = vmatmul.mubr.msk.bf16.gmra.mrb[24].mxu0 %vm389_vm0, %v374_v19 }
 0x116   : > { %1000 = vmatprep.mubr.msk.bf16.mxu0 %vm389_vm0, %v375_v20 }
 0x11d   : > { %1001 = vmatmul.mubr.msk.bf16.gmra.mrb[28].mxu0 %vm389_vm0, %v376_v21 }
 0x1b8   : > { %v974_v32 = vpop.f32.mrb[0].mxu0 }
 0x1b9   : > { %v472_v33 = vpop.f32.mrb[1].mxu0  ;;  %v481_v37 = vadd.f32 %v974_v32, %v1462_v31 }
 0x1ba   : > { %v473_v34 = vadd.f32 %v1462_v31, %v472_v33  ;;  %v975_v35 = vpop.f32.mrb[2].mxu0 }
 0x1bb   : > { %v475_v36 = vpop.f32.mrb[3].mxu0  ;;  %v484_v40 = vadd.f32 %v975_v35, %v1462_v31  ;;  %v601_v42 = vmax.f32 %v481_v37, 0.0 }
 0x1bc   : > { %v476_v38 = vadd.f32 %v1462_v31, %v475_v36  ;;  %v599_v39 = vmax.f32 %v473_v34, 0.0 }
 0x1bd   : > { %v602_v46 = vmax.f32 %v484_v40, 0.0 }
 0x1be   : > { %v600_v41 = vmax.f32 %v476_v38, 0.0 }
 0x1c0   : > { %v632_v43 = vadd.f32 %v600_v41, %v599_v39  ;;  %v978_v44 = vpop.f32.mrb[4].mxu0 }
 0x1c1   : > { %v488_v45 = vpop.f32.mrb[5].mxu0  ;;  %v497_v51 = vadd.f32 %v978_v44, %v1462_v31 }
 0x1c2   : > { %v633_v47 = vadd.f32 %v632_v43, %v601_v42  ;;  %v489_v48 = vadd.f32 %v1462_v31, %v488_v45  ;;  %v979_v49 = vpop.f32.mrb[6].mxu0 }
 0x1c3   : > { %v491_v50 = vpop.f32.mrb[7].mxu0  ;;  %v500_v56 = vadd.f32 %v979_v49, %v1462_v31  ;;  %v605_v58 = vmax.f32 %v497_v51, 0.0 }
 0x1c4   : > { %v603_v52 = vmax.f32 %v489_v48, 0.0  ;;  %v634_v53 = vadd.f32 %v633_v47, %v602_v46  ;;  %v492_v54 = vadd.f32 %v1462_v31, %v491_v50 }
 0x1c5   : > { %v606_v62 = vmax.f32 %v500_v56, 0.0 }
 0x1c6   : > { %v635_v55 = vadd.f32 %v634_v53, %v603_v52  ;;  %v604_v57 = vmax.f32 %v492_v54, 0.0 }
 0x1c8   : > { %v636_v59 = vadd.f32 %v635_v55, %v604_v57  ;;  %v982_v60 = vpop.f32.mrb[8].mxu0 }
 0x1c9   : > { %v504_v61 = vpop.f32.mrb[9].mxu0  ;;  %v513_v3 = vadd.f32 %v982_v60, %v1462_v31 }
 0x1ca   : > { %v637_v63 = vadd.f32 %v636_v59, %v605_v58  ;;  %v505_v0 = vadd.f32 %v1462_v31, %v504_v61  ;;  %v983_v1 = vpop.f32.mrb[10].mxu0 }
 0x1cb   : > { %v507_v2 = vpop.f32.mrb[11].mxu0  ;;  %v516_v8 = vadd.f32 %v983_v1, %v1462_v31  ;;  %v609_v10 = vmax.f32 %v513_v3, 0.0 }
 0x1cc   : > { %v607_v4 = vmax.f32 %v505_v0, 0.0  ;;  %v638_v5 = vadd.f32 %v637_v63, %v606_v62  ;;  %v508_v6 = vadd.f32 %v1462_v31, %v507_v2 }
 0x1cd   : > { %v610_v14 = vmax.f32 %v516_v8, 0.0 }
 0x1ce   : > { %v639_v7 = vadd.f32 %v638_v5, %v607_v4  ;;  %v608_v9 = vmax.f32 %v508_v6, 0.0 }
 0x1d0   : > { %v640_v11 = vadd.f32 %v639_v7, %v608_v9  ;;  %v986_v12 = vpop.f32.mrb[12].mxu0 }
 0x1d1   : > { %v520_v13 = vpop.f32.mrb[13].mxu0  ;;  %v529_v19 = vadd.f32 %v986_v12, %v1462_v31 }
 0x1d2   : > { %v641_v15 = vadd.f32 %v640_v11, %v609_v10  ;;  %v521_v16 = vadd.f32 %v1462_v31, %v520_v13  ;;  %v987_v17 = vpop.f32.mrb[14].mxu0 }
 0x1d3   : > { %v523_v18 = vpop.f32.mrb[15].mxu0  ;;  %v532_v24 = vadd.f32 %v987_v17, %v1462_v31  ;;  %v613_v26 = vmax.f32 %v529_v19, 0.0 }
 0x1d4   : > { %v611_v20 = vmax.f32 %v521_v16, 0.0  ;;  %v642_v21 = vadd.f32 %v641_v15, %v610_v14  ;;  %v524_v22 = vadd.f32 %v1462_v31, %v523_v18 }
 0x1d5   : > { %v614_v30 = vmax.f32 %v532_v24, 0.0 }
 0x1d6   : > { %v643_v23 = vadd.f32 %v642_v21, %v611_v20  ;;  %v612_v25 = vmax.f32 %v524_v22, 0.0 }
 0x1d8   : > { %v644_v27 = vadd.f32 %v643_v23, %v612_v25  ;;  %v990_v28 = vpop.f32.mrb[16].mxu0 }
 0x1d9   : > { %v536_v29 = vpop.f32.mrb[17].mxu0  ;;  %v545_v36 = vadd.f32 %v990_v28, %v1462_v31 }
 0x1da   : > { %v645_v32 = vadd.f32 %v644_v27, %v613_v26  ;;  %v537_v33 = vadd.f32 %v1462_v31, %v536_v29  ;;  %v991_v34 = vpop.f32.mrb[18].mxu0 }
 0x1db   : > { %v539_v35 = vpop.f32.mrb[19].mxu0  ;;  %v548_v41 = vadd.f32 %v991_v34, %v1462_v31  ;;  %v617_v43 = vmax.f32 %v545_v36, 0.0 }
 0x1dc   : > { %v615_v37 = vmax.f32 %v537_v33, 0.0  ;;  %v646_v38 = vadd.f32 %v645_v32, %v614_v30  ;;  %v540_v39 = vadd.f32 %v1462_v31, %v539_v35 }
 0x1dd   : > { %v618_v47 = vmax.f32 %v548_v41, 0.0 }
 0x1de   : > { %v647_v40 = vadd.f32 %v646_v38, %v615_v37  ;;  %v616_v42 = vmax.f32 %v540_v39, 0.0  ;;  %v631_v38 = vld [vmem:[#allocation2] sm:$0x1] }
 0x1e0   : > { %v648_v44 = vadd.f32 %v647_v40, %v616_v42  ;;  %v994_v45 = vpop.f32.mrb[20].mxu0 }
 0x1e1   : > { %v552_v46 = vpop.f32.mrb[21].mxu0  ;;  %v561_v52 = vadd.f32 %v994_v45, %v1462_v31 }
 0x1e2   : > { %v649_v48 = vadd.f32 %v648_v44, %v617_v43  ;;  %v553_v49 = vadd.f32 %v1462_v31, %v552_v46  ;;  %v995_v50 = vpop.f32.mrb[22].mxu0 }
 0x1e3   : > { %v555_v51 = vpop.f32.mrb[23].mxu0  ;;  %v564_v57 = vadd.f32 %v995_v50, %v1462_v31  ;;  %v621_v59 = vmax.f32 %v561_v52, 0.0 }
 0x1e4   : > { %v619_v53 = vmax.f32 %v553_v49, 0.0  ;;  %v650_v54 = vadd.f32 %v649_v48, %v618_v47  ;;  %v556_v55 = vadd.f32 %v1462_v31, %v555_v51  ;;  %v786_v47 = vld [vmem:[%s303_s9] sm:$0x1] }
 0x1e5   : > { %v622_v63 = vmax.f32 %v564_v57, 0.0 }
 0x1e6   : > { %v651_v56 = vadd.f32 %v650_v54, %v619_v53  ;;  %v620_v58 = vmax.f32 %v556_v55, 0.0 }
 0x1e8   : > { %v652_v60 = vadd.f32 %v651_v56, %v620_v58  ;;  %v998_v61 = vpop.f32.mrb[24].mxu0 }
 0x1e9   : > { %v568_v62 = vpop.f32.mrb[25].mxu0  ;;  %v577_v4 = vadd.f32 %v998_v61, %v1462_v31 }
 0x1ea   : > { %v653_v0 = vadd.f32 %v652_v60, %v621_v59  ;;  %v569_v1 = vadd.f32 %v1462_v31, %v568_v62  ;;  %v999_v2 = vpop.f32.mrb[26].mxu0 }
 0x1eb   : > { %v571_v3 = vpop.f32.mrb[27].mxu0  ;;  %v580_v9 = vadd.f32 %v999_v2, %v1462_v31  ;;  %v625_v11 = vmax.f32 %v577_v4, 0.0 }
 0x1ec   : > { %v623_v5 = vmax.f32 %v569_v1, 0.0  ;;  %v654_v6 = vadd.f32 %v653_v0, %v622_v63  ;;  %v572_v7 = vadd.f32 %v1462_v31, %v571_v3 }
 0x1ed   : > { %v626_v15 = vmax.f32 %v580_v9, 0.0 }
 0x1ee   : > { %v655_v8 = vadd.f32 %v654_v6, %v623_v5  ;;  %v624_v10 = vmax.f32 %v572_v7, 0.0 }
 0x1f0   : > { %v656_v12 = vadd.f32 %v655_v8, %v624_v10  ;;  %v1002_v13 = vpop.f32.mrb[28].mxu0 }
 0x1f1   : > { %v584_v14 = vpop.f32.mrb[29].mxu0  ;;  %v593_v20 = vadd.f32 %v1002_v13, %v1462_v31 }
 0x1f2   : > { %v657_v16 = vadd.f32 %v656_v12, %v625_v11  ;;  %v585_v17 = vadd.f32 %v1462_v31, %v584_v14  ;;  %v1003_v18 = vpop.f32.mrb[30].mxu0 }
 0x1f3   : > { %v587_v19 = vpop.f32.mrb[31].mxu0  ;;  %v596_v25 = vadd.f32 %v1003_v18, %v1462_v31  ;;  %v629_v27 = vmax.f32 %v593_v20, 0.0 }
 0x1f4   : > { %v627_v21 = vmax.f32 %v585_v17, 0.0  ;;  %v658_v22 = vadd.f32 %v657_v16, %v626_v15  ;;  %v588_v23 = vadd.f32 %v1462_v31, %v587_v19  ;;  %v693_v31 = vld [vmem:[#allocation8] sm:$0x1] }
 0x1f5   : > { %v630_v29 = vmax.f32 %v596_v25, 0.0 }
 0x1f6   : > { %v659_v24 = vadd.f32 %v658_v22, %v627_v21  ;;  %v628_v26 = vmax.f32 %v588_v23, 0.0 }
 0x1f8   : > { %v660_v28 = vadd.f32 %v659_v24, %v628_v26 }
 0x1fa   : > { %v661_v30 = vadd.f32 %v660_v28, %v629_v27 }
 0x1fc   : > { %v662_v32 = vadd.f32 %v661_v30, %v630_v29 }
 0x1fe   : > { %v663_v33 = vrot.slane %v662_v32, 4 }
 0x200   : > { %v664_v34 = vadd.f32 %v663_v33, %v662_v32 }
 0x202   : > { %v665_v35 = vrot.slane %v664_v34, 2 }
 0x204   : > { %v666_v36 = vadd.f32 %v665_v35, %v664_v34 }
 0x206   : > { %v667_v37 = vrot.slane %v666_v36, 1 }
 0x208   : > { %v668_v39 = vadd.f32 %v667_v37, %v666_v36 }
 0x20a   : > { %v669_v40 = vadd.f32 %v668_v39, %v631_v38 }
 0x20c   : > { %670 = vst [vmem:[#allocation2] sm:$0x1] %v669_v40 }
 0x213   : > { %v674_v41 = vld [vmem:[#allocation2] sm:$0x1] }
 0x214   : > { %v675_v42 = vmul.f32 0.00390625, %v674_v41 }
 0x216   : > { %v676_v43 = vpack.c.bf16 %v675_v42, %v675_v42 }
 0x218   : > { %1021 = vmatmul.mubr.bf16.vlgmr.msra.gmra.mrb[0].mxu1 %v676_v43 }
 0x2eb   : > { %v776_v44 = vpop.f32.mrb[0].mxu1 }
 0x2ec   : > { %v777_v45 = vadd.f32 %v776_v44, %v693_v31  ;;  %v1022_v46 = vpop.f32.mrb[1].mxu1 }
 0x2ed   : > { %v779_v48 = vpop.f32.mrb[2].mxu1 }
 0x2ee   : > { %v782_v49 = vpack.c.bf16 %v777_v45, %v777_v45  ;;  %v1023_v50 = vpop.f32.mrb[3].mxu1 }
 0x2f0   : > { %v787_v51 = vsel %vm785_vm4, %v782_v49, %v786_v47 }
 0x2f1   : > { %788 = vst [vmem:[%s303_s9] sm:$0x1] %v787_v51 }
 0x2f2 PF: > { %s18_s20 = sadd.s32 1, %s1256_s20   ;;  %s1526_s18 = smov %s1252_s19 }
 0x2f3   : > { %p15_p8 = scmp.ge.s32.totalorder %s18_s20, 4   ;;  %s1527_s19 = smov %s1529_s26 }
 0x2f5   :  { %17 = sbr.rel (!%p15_p8) target bundleno = 4 (0x4), region = 95 }
 0x2fc   :  { %806 = vsyncpa [#allocation4], 1 }
 0x2fd   :  { %808 = vsyncpa [#allocation4 + $0x1], 1 }
 0x2fe   :  { %809 = vsyncpa [#allocation6], 1 }
 0x2ff   :  { %810 = vsyncpa [#allocation9], 1 }

// kernel: mainnet_forward.3
= control target key start
LH: loop header
LB: loop body
LE: loop exit
PB: predicated region body
PF: predicated region fallthrough
CT: control target
= control target key end

     0   :  { %s4711_s0 = inlined_call_operand.vmem [shape: bf16[2,128], index: 0, kind: input, shape index: {}]   ;;  %s4712_s1 = inlined_call_operand.hbm [shape: bf16[12,128,512], index: 1, kind: input, shape index: {}]   ;;  %s4713_s2 = inlined_call_operand.hbm [shape: f32[12,1,512], index: 2, kind: input, shape index: {}]   ;;  %s4714_s3 = inlined_call_operand.hbm [shape: bf16[12,16,512], index: 3, kind: input, shape index: {}]   ;;  %s4715_s4 = inlined_call_operand.hbm [shape: f32[12,1,16], index: 4, kind: input, shape index: {}]   ;;  %s4716_s5 = inlined_call_operand.vmem [shape: f32[12,2,16], index: 5, kind: output, shape index: {}]  }
   0x1   :  { %4718 = sst [smem:[#allocation12_spill]] %s4712_s1 }
   0x2   :  { %10 = vsyncpa [#allocation3], 0 }
   0x3   :  { %12 = vsyncpa [#allocation3 + $0x1], 0 }
   0x4   :  { %13 = vsyncpa [#allocation5], 0 }
   0x5   :  { %15 = vsyncpa [#allocation5 + $0x1], 0 }
   0x6   :  { %16 = vsyncpa [#allocation8], 0 }
   0x7   :  { %18 = vsyncpa [#allocation8 + $0x1], 0  ;;  %s4138_s18 = smov 0   ;;  %s4140_s19 = smov 0  }
   0x8   :  { %s4142_s20 = smov 0   ;;  %s4144_s21 = smov 0  }
   0x9 LB: > { %s4157_s22 = sadd.s32 4294967295, %s4096_s21   ;;  %s4160_s23 = sadd.s32 1, %s4096_s21   ;;  %s4096_s21 = sphi %s4144_s21, %s4729_s21   ;;  %s4092_s20 = sphi %s4142_s20, %s4728_s20   ;;  %s4088_s19 = sphi %s4140_s19, %s4727_s19   ;;  %s4084_s18 = sphi %s4138_s18, %s4726_s18  }
   0xa   : > { %s49_s24 = ssub.s32 %s4096_s21, %s4160_s23  ;;  %s52_s25 = sadd.s32 1, %s4092_s20 }
   0xb   : > { %p50_p0 = scmp.eq.s32.totalorder %s49_s24, 0  ;;  %p59_p1 = scmp.ne.s32.totalorder %s4092_s20, %s4088_s19 }
   0xc   : > { %p60_p2 = scmp.eq.s32.totalorder %s4096_s21, 0  ;;  %p65_p3 = scmp.ne.s32.totalorder %s4088_s19, %s4084_s18 }
   0xd   : > { %s4170_s26 = scalar_select %p50_p0, %s4092_s20, %s52_s25  }
   0xe   : > { %p61_p4 = por %p60_p2, %p59_p1  ;;  %p66_p5 = scmp.eq.s32.totalorder %s4157_s22, 0 }
   0xf   : > { %p3546_p6 = scmp.lt.s32.totalorder %s4096_s21, 2  ;;  %s4179_s28 = sand.u32 1, %s4092_s20  }
  0x10   : > { %p4174_p7 = por %p66_p5, %p65_p3  ;;  %s218_s30 = sand.u32 1, %s4096_s21  }
  0x11   : > { %p4181_p8 = pnand %p3546_p6, %p61_p4  ;;  %s3518_s6 = smul.u32 24, %s4179_s28 }
  0x12   : > { %s4719_s27 = scalar_select %p4174_p7, 1, 0 }
  0x13   : > { %s3485_s7 = smul.u32 384, %s4096_s21  ;;  %s222_s11 = scalar_lea.vmem [#allocation4], %s3518_s6 }
  0x14   : > { %s230_s12 = sshll.u32 %s222_s11, 4  ;;  %s4195_s13 = scalar_lea.sflag [#allocation5], %s218_s30  ;;  %s4193_s12 = int_to_ptr.vmem [resolvable:$true] %s230_s12 }
  0x15   : > { %s4191_s10 = scalar_lea.hbm %s4713_s2, %s3485_s7  ;;  %p4201_p10 = pneg %p4181_p8 }
  0x16   : > { %s3934_s14 = scalar_lea.hbm %s4191_s10, 384  ;;  %s3939_s18 = scalar_lea.hbm %s4713_s2, 768 }
  0x17   : > { %p3935_p9 = scmp.ne.s32.totalorder %s4191_s10, %s3934_s14  ;;  %p3940_p13 = scmp.lt.u32.totalorder %s4191_s10, %s4713_s2 }
  0x18   : > { %p3941_p0 = scmp.lt.u32.totalorder %s3939_s18, %s3934_s14  ;;  %p3943_p2 = scmp.lt.u32.totalorder %s3934_s14, %s4191_s10 }
  0x19   : > { %p3937_p11 = pnand %p4201_p10, %p3935_p9 }
  0x1a   : > { %p3942_p1 = por %p3941_p0, %p3940_p13 }
  0x1b   : > { %p3938_p12 = pneg %p3937_p11 }
  0x1c   : > { %p3944_p3 = por %p3943_p2, %p3942_p1 }
  0x1e   : > { %p3945_p4 = pnand %p3944_p3, %p3938_p12 }
  0x20   : > { %3948 = shalt.err (!%p3945_p4)
}
  0x21   : > { %s3949_s30 = scalar_lea.vmem %s4193_s12, 384  ;;  %s4098_s6 = smov [#allocation4]  }
  0x22   : > { %p3950_p5 = scmp.ne.s32.totalorder %s4193_s12, %s3949_s30  ;;  %s3954_s7 = sshll.u32 %s4098_s6, 4  ;;  %s3955_s7 = int_to_ptr.vmem [resolvable:$false] %s3954_s7 }
  0x23   : > { %s3956_s8 = scalar_lea.vmem %s3955_s7, 768  ;;  %p3957_p11 = scmp.lt.s32.totalorder %s4193_s12, %s3955_s7 }
  0x24   : > { %p3952_p6 = pnand %p3950_p5, %p4201_p10  ;;  %p3958_p7 = scmp.lt.s32.totalorder %s3956_s8, %s3949_s30 }
  0x26   : > { %p3953_p9 = pneg %p3952_p6  ;;  %p3959_p13 = por %p3958_p7, %p3957_p11 }
  0x28   : > { %p3960_p0 = pnand %p3959_p13, %p3953_p9 }
  0x2a   : > { %3963 = shalt.err (!%p3960_p0)
}
  0x2b   : > { %s4099_s9 = smov 64   ;;  %s4100_s11 = smov 4  }
  0x2c   : > { %3539 = dma.hbm_to_vmem [thread:$0]  (!%p4181_p8), %s4191_s10, 384, %s4193_s12, %s4195_s13, %s4099_s9, %s4099_s9, %s4100_s11  }
  0x2d   : > { %p3050_p12 = scmp.ge.s32.totalorder %s4096_s21, 1  ;;  %p281_p1 = scmp.lt.s32.totalorder %s4096_s21, 3 }
  0x2e   : > { %s3517_s14 = smul.u32 1536, %s4179_s28  ;;  %s4723_s1 = sld [smem:[#allocation12_spill]] }
  0x2f   : > { %p4228_p7 = pnand %p3050_p12, %p281_p1  ;;  %s3484_s17 = smul.u32 24576, %s4096_s21 }
  0x30   : > { %s200_s30 = scalar_lea.vmem [#allocation2], %s3517_s14  ;;  %s197_s10 = scalar_lea.sflag [#allocation3], %s4179_s28 }
  0x31   : > { %s4722_s16 = scalar_select %p4228_p7, 1, 0 }
  0x32   : > { %s208_s6 = sshll.u32 %s200_s30, 4  ;;  %s4238_s6 = int_to_ptr.vmem [resolvable:$true] %s208_s6 }
  0x34   : > { %s4236_s25 = scalar_lea.hbm %s4723_s1, %s3484_s17  ;;  %s3969_s9 = scalar_lea.hbm %s4723_s1, 49152 }
  0x35   : > { %s3964_s12 = scalar_lea.hbm %s4236_s25, 24576  ;;  %p3970_p5 = scmp.lt.u32.totalorder %s4236_s25, %s4723_s1 }
  0x36   : > { %p3965_p2 = scmp.ne.s32.totalorder %s4236_s25, %s3964_s12  ;;  %p3971_p6 = scmp.lt.u32.totalorder %s3969_s9, %s3964_s12 }
  0x37   : > { %p3973_p11 = scmp.lt.u32.totalorder %s3964_s12, %s4236_s25 }
  0x38   : > { %p3967_p3 = pnand %p3965_p2, %p4201_p10  ;;  %p3972_p9 = por %p3971_p6, %p3970_p5 }
  0x3a   : > { %p3968_p4 = pneg %p3967_p3  ;;  %p3974_p13 = por %p3973_p11, %p3972_p9 }
  0x3c   : > { %p3975_p0 = pnand %p3974_p13, %p3968_p4 }
  0x3e   : > { %3978 = shalt.err (!%p3975_p0)
}
  0x3f   : > { %s3979_s14 = scalar_lea.vmem %s4238_s6, 24576  ;;  %s4101_s18 = smov [#allocation2]  }
  0x40   : > { %p3980_p12 = scmp.ne.s32.totalorder %s4238_s6, %s3979_s14  ;;  %s3984_s24 = sshll.u32 %s4101_s18, 4  ;;  %s3985_s24 = int_to_ptr.vmem [resolvable:$false] %s3984_s24 }
  0x41   : > { %s3986_s30 = scalar_lea.vmem %s3985_s24, 49152  ;;  %p3987_p3 = scmp.lt.s32.totalorder %s4238_s6, %s3985_s24 }
  0x42   : > { %p3982_p1 = pnand %p3980_p12, %p4201_p10  ;;  %p3988_p7 = scmp.lt.s32.totalorder %s3986_s30, %s3979_s14 }
  0x44   : > { %p3983_p2 = pneg %p3982_p1  ;;  %p3989_p5 = por %p3988_p7, %p3987_p3 }
  0x46   : > { %p3990_p6 = pnand %p3989_p5, %p3983_p2 }
  0x48   : > { %3993 = shalt.err (!%p3990_p6)
}
  0x49   : > { %s4102_s12 = smov 256   ;;  %s4103_s7 = smov 16  }
  0x4a   : > { %3536 = dma.hbm_to_vmem [thread:$0]  (!%p4181_p8), %s4236_s25, 24576, %s4238_s6, %s197_s10, %s4102_s12, %s4102_s12, %s4103_s7  }
  0x4b   : > { %s3519_s8 = smul.u32 192, %s4179_s28  ;;  %s3999_s10 = scalar_lea.hbm %s4714_s3, 6144 }
  0x4c   : > { %s3486_s9 = smul.u32 3072, %s4096_s21 }
  0x4d   : > { %s3520_s11 = smul.u32 6, %s4179_s28  ;;  %s244_s24 = scalar_lea.vmem [#allocation6], %s3519_s8 }
  0x4e   : > { %s4273_s18 = scalar_lea.hbm %s4714_s3, %s3486_s9  ;;  %s252_s30 = sshll.u32 %s244_s24, 4  ;;  %s4275_s30 = int_to_ptr.vmem [resolvable:$true] %s252_s30 }
  0x4f   : > { %s3994_s1 = scalar_lea.hbm %s4273_s18, 3072  ;;  %p4000_p11 = scmp.lt.u32.totalorder %s4273_s18, %s4714_s3 }
  0x50   : > { %p3995_p7 = scmp.ne.s32.totalorder %s4273_s18, %s3994_s1  ;;  %p4001_p13 = scmp.lt.u32.totalorder %s3999_s10, %s3994_s1 }
  0x51   : > { %p4003_p12 = scmp.lt.u32.totalorder %s3994_s1, %s4273_s18 }
  0x52   : > { %p3997_p4 = pnand %p3995_p7, %p4201_p10  ;;  %p4002_p0 = por %p4001_p13, %p4000_p11 }
  0x54   : > { %p3998_p9 = pneg %p3997_p4  ;;  %p4004_p1 = por %p4003_p12, %p4002_p0 }
  0x56   : > { %p4005_p2 = pnand %p4004_p1, %p3998_p9 }
  0x58   : > { %4008 = shalt.err (!%p4005_p2)
}
  0x59   : > { %s4009_s8 = scalar_lea.vmem %s4275_s30, 3072  ;;  %s4104_s14 = smov [#allocation6]  }
  0x5a   : > { %p4010_p3 = scmp.ne.s32.totalorder %s4275_s30, %s4009_s8  ;;  %s4014_s24 = sshll.u32 %s4104_s14, 4  ;;  %s4015_s24 = int_to_ptr.vmem [resolvable:$false] %s4014_s24 }
  0x5b   : > { %s4016_s25 = scalar_lea.vmem %s4015_s24, 6144  ;;  %p4017_p7 = scmp.lt.s32.totalorder %s4275_s30, %s4015_s24 }
  0x5c   : > { %p4012_p5 = pnand %p4010_p3, %p4201_p10  ;;  %p4018_p4 = scmp.lt.s32.totalorder %s4016_s25, %s4009_s8 }
  0x5e   : > { %p4013_p6 = pneg %p4012_p5  ;;  %p4019_p11 = por %p4018_p4, %p4017_p7 }
  0x60   : > { %p4020_p13 = pnand %p4019_p11, %p4013_p6 }
  0x62   : > { %4023 = shalt.err (!%p4020_p13)
}
  0x63   : > { %3542 = dma.hbm_to_vmem [thread:$0]  (!%p4181_p8), %s4273_s18, 3072, %s4275_s30, %s4195_s13, %s4102_s12, %s4102_s12, %s4103_s7  }
  0x64   : > { %s3483_s1 = smul.u32 96, %s4096_s21  ;;  %s266_s6 = scalar_lea.vmem [#allocation7], %s3520_s11 }
  0x65   : > { %s273_s10 = sshll.u32 %s266_s6, 4  ;;  %s263_s14 = scalar_lea.sflag [#allocation8], %s4179_s28  ;;  %s4305_s10 = int_to_ptr.vmem [resolvable:$true] %s273_s10 }
  0x66   : > { %s4310_s8 = scalar_lea.hbm %s4715_s4, %s3483_s1  ;;  %s4029_s12 = scalar_lea.hbm %s4715_s4, 192 }
  0x67   : > { %s4024_s24 = scalar_lea.hbm %s4310_s8, 96  ;;  %p4030_p1 = scmp.lt.u32.totalorder %s4310_s8, %s4715_s4 }
  0x68   : > { %p4025_p9 = scmp.ne.s32.totalorder %s4310_s8, %s4024_s24  ;;  %p4031_p2 = scmp.lt.u32.totalorder %s4029_s12, %s4024_s24 }
  0x69   : > { %p4033_p5 = scmp.lt.u32.totalorder %s4024_s24, %s4310_s8 }
  0x6a   : > { %p4027_p0 = pnand %p4025_p9, %p4201_p10  ;;  %p4032_p3 = por %p4031_p2, %p4030_p1 }
  0x6c   : > { %p4028_p12 = pneg %p4027_p0  ;;  %p4034_p6 = por %p4033_p5, %p4032_p3 }
  0x6e   : > { %p4035_p7 = pnand %p4034_p6, %p4028_p12 }
  0x70   : > { %4038 = shalt.err (!%p4035_p7)
}
  0x71   : > { %s4039_s30 = scalar_lea.vmem %s4305_s10, 96  ;;  %s4105_s25 = smov [#allocation7]  }
  0x72   : > { %p4040_p4 = scmp.ne.s32.totalorder %s4305_s10, %s4039_s30  ;;  %s4044_s1 = sshll.u32 %s4105_s25, 4  ;;  %s4045_s1 = int_to_ptr.vmem [resolvable:$false] %s4044_s1 }
  0x73   : > { %s4046_s6 = scalar_lea.vmem %s4045_s1, 192  ;;  %p4047_p9 = scmp.lt.s32.totalorder %s4305_s10, %s4045_s1 }
  0x74   : > { %p4042_p11 = pnand %p4040_p4, %p4201_p10  ;;  %p4048_p0 = scmp.lt.s32.totalorder %s4046_s6, %s4039_s30 }
  0x76   : > { %p4043_p13 = pneg %p4042_p11  ;;  %p4049_p1 = por %p4048_p0, %p4047_p9 }
  0x78   : > { %p4050_p2 = pnand %p4049_p1, %p4043_p13 }
  0x7a   : > { %4053 = shalt.err (!%p4050_p2)
}
  0x7b   : > { %s4106_s17 = smov 1   ;;  %p4724_p10 = scmp.ne.s32.totalorder %s4722_s16, 0 }
  0x7c   : > { %3545 = dma.hbm_to_vmem [thread:$0]  (!%p4181_p8), %s4310_s8, 96, %s4305_s10, %s263_s14, %s4103_s7, %s4103_s7, %s4106_s17  }
  0x7d   : > { %285 = sbr.rel (%p4724_p10) target bundleno = 1897 (0x769), region = 40  ;;  %s287_s15 = sand.u32 (!%p4724_p10), 1, %s4088_s19  }
  0x7e   : > { %s3521_s9 = smul.u32 (!%p4724_p10), 1536, %s287_s15  ;;  %s288_s24 = scalar_lea.sflag (!%p4724_p10), [#allocation3], %s287_s15 }
  0x7f   : > { %p4725_p12 = scmp.ne.s32.totalorder (!%p4724_p10), %s4719_s27, 0 }
  0x80   : > { %s4341_s21 = scalar_lea.vmem (!%p4724_p10), [#allocation2], %s3521_s9 }
  0x84   : > { %4071 = dma.done.wait (%p4725_p12), %s288_s24, 24576  }
  0x85   : > { %4073 = vsyncadd (%p4725_p12), %s288_s24, 4294942720  ;;  %s296_s28 = sand.u32 1, %s4157_s22   ;;  %s3522_s29 = smul.u32 24, %s287_s15 }
  0x86   : > { %s297_s7 = scalar_lea.sflag [#allocation5], %s296_s28 }
  0x87   : > { %s4348_s10 = scalar_lea.vmem [#allocation4], %s3522_s29 }
  0x88   : > { %4075 = dma.done.wait (%p4725_p12), %s297_s7, 3456  }
  0x89   : > { %4077 = vsyncadd (%p4725_p12), %s297_s7, 4294963840  ;;  %s3523_s16 = smul.u32 192, %s287_s15  ;;  %s315_s13 = scalar_lea.sflag [#allocation8], %s287_s15 }
  0x8a   : > { %s3524_s8 = smul.u32 6, %s287_s15 }
  0x8b   : > { %s4354_s14 = scalar_lea.vmem [#allocation6], %s3523_s16 }
  0x8c   : > { %s4356_s12 = scalar_lea.vmem [#allocation7], %s3524_s8 }
  0x8d   : > { %4079 = dma.done.wait (%p4725_p12), %s315_s13, 96  }
  0x8e   : > { %4081 = vsyncadd (%p4725_p12), %s315_s13, 4294967200  ;;  %v4107_v0 = vmov 0   ;;  %v3585_v1 = vld [vmem:[%s4341_s21 + $0x4] ss:$16 sps:$4 sm:$0xff]   ;;  %v3587_v2 = vld [vmem:[%s4341_s21] ss:$16 sps:$4 sm:$0xff]   ;;  %v406_v53 = vlaneseq }
  0x8f   : > { %618 = vmatprep.mubr.bf16.mxu0 %v4107_v0  ;;  %659 = vmatprep.mubr.bf16.mxu1 %v4107_v0  ;;  %v3588_v3 = vld [vmem:[%s4341_s21 + $0x24] ss:$16 sps:$4 sm:$0xff]   ;;  %v3590_v4 = vld [vmem:[%s4341_s21 + $0x20] ss:$16 sps:$4 sm:$0xff]   ;;  %v3594_v6 = vld [vmem:[%s4341_s21 + $0xc] ss:$16 sps:$4 sm:$0xff]  }
  0x90   : > { %586 = vmatprep.subr.bf16.mxu0 %v3585_v1  ;;  %v3591_v5 = vld [vmem:[%s4341_s21 + $0x44] ss:$16 sps:$4 sm:$0xff]   ;;  %v3596_v7 = vld [vmem:[%s4341_s21 + $0x8] ss:$16 sps:$4 sm:$0xff]   ;;  %v3593_v8 = vld [vmem:[%s4341_s21 + $0x40] ss:$16 sps:$4 sm:$0xff]   ;;  %627 = vmatprep.subr.bf16.mxu1 %v3594_v6 }
  0x91   : > { %587 = vmatpush1.bf16.msra.mxu0 %v3587_v2  ;;  %628 = vmatpush1.bf16.msra.mxu1 %v3596_v7  ;;  %v3600_v9 = vld [vmem:[%s4341_s21 + $0x2c] ss:$16 sps:$4 sm:$0xff]   ;;  %v3602_v10 = vld [vmem:[%s4341_s21 + $0x28] ss:$16 sps:$4 sm:$0xff]   ;;  %v3597_v11 = vld [vmem:[%s4341_s21 + $0x64] ss:$16 sps:$4 sm:$0xff]  }
  0x92   : > { %588 = vmatprep.subr.bf16.mxu0 %v3588_v3  ;;  %629 = vmatprep.subr.bf16.mxu1 %v3600_v9  ;;  %v3599_v12 = vld [vmem:[%s4341_s21 + $0x60] ss:$16 sps:$4 sm:$0xff]   ;;  %v3606_v13 = vld [vmem:[%s4341_s21 + $0x4c] ss:$16 sps:$4 sm:$0xff]   ;;  %v3603_v14 = vld [vmem:[%s4341_s21 + $0x84] ss:$16 sps:$4 sm:$0xff]  }
  0x93   : > { %v3608_v15 = vld [vmem:[%s4341_s21 + $0x48] ss:$16 sps:$4 sm:$0xff]   ;;  %v3612_v16 = vld [vmem:[%s4341_s21 + $0x6c] ss:$16 sps:$4 sm:$0xff]   ;;  %v3605_v17 = vld [vmem:[%s4341_s21 + $0x80] ss:$16 sps:$4 sm:$0xff]  }
  0x94   : > { %v3609_v18 = vld [vmem:[%s4341_s21 + $0xa4] ss:$16 sps:$4 sm:$0xff]   ;;  %v3614_v19 = vld [vmem:[%s4341_s21 + $0x68] ss:$16 sps:$4 sm:$0xff]   ;;  %v3618_v20 = vld [vmem:[%s4341_s21 + $0x8c] ss:$16 sps:$4 sm:$0xff]  }
  0x95   : > { %589 = vmatpush1.bf16.msra.mxu0 %v3590_v4  ;;  %630 = vmatpush1.bf16.msra.mxu1 %v3602_v10  ;;  %v3611_v21 = vld [vmem:[%s4341_s21 + $0xa0] ss:$16 sps:$4 sm:$0xff]   ;;  %v3615_v22 = vld [vmem:[%s4341_s21 + $0xc4] ss:$16 sps:$4 sm:$0xff]   ;;  %v3620_v23 = vld [vmem:[%s4341_s21 + $0x88] ss:$16 sps:$4 sm:$0xff]  }
  0x96   : > { %590 = vmatprep.subr.bf16.mxu0 %v3591_v5  ;;  %631 = vmatprep.subr.bf16.mxu1 %v3606_v13  ;;  %v3624_v24 = vld [vmem:[%s4341_s21 + $0xac] ss:$16 sps:$4 sm:$0xff]   ;;  %v3617_v25 = vld [vmem:[%s4341_s21 + $0xc0] ss:$16 sps:$4 sm:$0xff]   ;;  %v3621_v26 = vld [vmem:[%s4341_s21 + $0xe4] ss:$16 sps:$4 sm:$0xff]  }
  0x97   : > { %v3626_v27 = vld [vmem:[%s4341_s21 + $0xa8] ss:$16 sps:$4 sm:$0xff]   ;;  %v3627_v28 = vld [vmem:[%s4341_s21 + $0xcc] ss:$16 sps:$4 sm:$0xff]   ;;  %v3623_v29 = vld [vmem:[%s4341_s21 + $0xe0] ss:$16 sps:$4 sm:$0xff]  }
  0x98   : > { %v3629_v30 = vld [vmem:[%s4341_s21 + $0xc8] ss:$16 sps:$4 sm:$0xff]   ;;  %v3630_v31 = vld [vmem:[%s4341_s21 + $0xec] ss:$16 sps:$4 sm:$0xff]   ;;  %v3635_v32 = vld [vmem:[%s4354_s14 + $0x4] ss:$16 sps:$4 sm:$0xff]  }
  0x99   : > { %591 = vmatpush1.bf16.msra.mxu0 %v3593_v8  ;;  %632 = vmatpush1.bf16.msra.mxu1 %v3608_v15  ;;  %v4399_v33 = vld [vmem:[%s4711_s0] sm:$0x1]  ;;  %v3632_v34 = vld [vmem:[%s4341_s21 + $0xe8] ss:$16 sps:$4 sm:$0xff]   ;;  %v3638_v36 = vld [vmem:[%s4341_s21 + $0x104] ss:$16 sps:$4 sm:$0xff]  }
  0x9a   : > { %592 = vmatprep.subr.bf16.mxu0 %v3597_v11  ;;  %633 = vmatprep.subr.bf16.mxu1 %v3612_v16  ;;  %v3633_v35 = vld [vmem:[%s4354_s14] ss:$16 sps:$4 sm:$0xff]   ;;  %v3644_v38 = vld [vmem:[%s4341_s21 + $0x124] ss:$16 sps:$4 sm:$0xff]   ;;  %v3641_v39 = vld [vmem:[%s4354_s14 + $0xc] ss:$16 sps:$4 sm:$0xff]  }
  0x9b   : > { %v3636_v37 = vld [vmem:[%s4341_s21 + $0x100] ss:$16 sps:$4 sm:$0xff]   ;;  %v3647_v42 = vld [vmem:[%s4341_s21 + $0x144] ss:$16 sps:$4 sm:$0xff]   ;;  %v407_v54 = vshrl.u32 %v406_v53, 7  ;;  %s364_s18 = smul.u32 6, %s4157_s22 }
  0x9c   : > { %v3642_v40 = vld [vmem:[%s4341_s21 + $0x120] ss:$16 sps:$4 sm:$0xff]   ;;  %v3650_v43 = vld [vmem:[%s4341_s21 + $0x164] ss:$16 sps:$4 sm:$0xff]   ;;  %v3639_v6 = vld [vmem:[%s4354_s14 + $0x8] ss:$16 sps:$4 sm:$0xff]  }
  0x9d   : > { %593 = vmatpush1.bf16.msra.mxu0 %v3599_v12  ;;  %634 = vmatpush1.bf16.msra.mxu1 %v3614_v19  ;;  %v3645_v41 = vld [vmem:[%s4341_s21 + $0x140] ss:$16 sps:$4 sm:$0xff]   ;;  %v3656_v45 = vld [vmem:[%s4341_s21 + $0x184] ss:$16 sps:$4 sm:$0xff]   ;;  %v4424_v55 = vsub.s32 0, %v407_v54  ;;  %v4427_v57 = vsub.s32 1, %v407_v54 }
  0x9e   : > { %594 = vmatprep.subr.bf16.mxu0 %v3603_v14  ;;  %635 = vmatprep.subr.bf16.mxu1 %v3618_v20  ;;  %v3648_v44 = vld [vmem:[%s4341_s21 + $0x160] ss:$16 sps:$4 sm:$0xff]   ;;  %v3662_v48 = vld [vmem:[%s4341_s21 + $0x1a4] ss:$16 sps:$4 sm:$0xff]   ;;  %v4431_v60 = vsub.s32 3, %v407_v54  ;;  %v4435_v9 = vsub.s32 2, %v407_v54 }
  0x9f   : > { %v3654_v46 = vld [vmem:[%s4341_s21 + $0x180] ss:$16 sps:$4 sm:$0xff]   ;;  %v3668_v50 = vld [vmem:[%s4341_s21 + $0x1c4] ss:$16 sps:$4 sm:$0xff]   ;;  %v3653_v11 = vld [vmem:[%s4341_s21 + $0x10c] ss:$16 sps:$4 sm:$0xff]  }
  0xa0   : > { %v3660_v47 = vld [vmem:[%s4341_s21 + $0x1a0] ss:$16 sps:$4 sm:$0xff]   ;;  %v3674_v52 = vld [vmem:[%s4341_s21 + $0x1e4] ss:$16 sps:$4 sm:$0xff]   ;;  %v3659_v20 = vld [vmem:[%s4341_s21 + $0x12c] ss:$16 sps:$4 sm:$0xff]  }
  0xa1   : > { %595 = vmatpush1.bf16.msra.mxu0 %v3605_v17  ;;  %636 = vmatpush1.bf16.msra.mxu1 %v3620_v23  ;;  %v3666_v49 = vld [vmem:[%s4341_s21 + $0x1c0] ss:$16 sps:$4 sm:$0xff]   ;;  %v3663_v23 = vld [vmem:[%s4341_s21 + $0x148] ss:$16 sps:$4 sm:$0xff]   ;;  %p365_p8 = scmp.lt.s32.totalorder %s364_s18, 11  ;;  %vm789_vm0 = vcmask 123904  }
  0xa2   : > { %596 = vmatprep.subr.bf16.mxu0 %v3609_v18  ;;  %637 = vmatprep.subr.bf16.mxu1 %v3624_v24  ;;  %v3672_v51 = vld [vmem:[%s4341_s21 + $0x1e0] ss:$16 sps:$4 sm:$0xff]   ;;  %v3651_v18 = vld [vmem:[%s4341_s21 + $0x108] ss:$16 sps:$4 sm:$0xff]   ;;  %v3671_v24 = vld [vmem:[%s4341_s21 + $0x16c] ss:$16 sps:$4 sm:$0xff]  }
  0xa3   : > { %v404_v56 = vld [vmem:[%s4348_s10] sm:$0xf]  ;;  %s4731_s18 = smov (!%p365_p8, %s364_s18), 11 }
  0xa4   : > { %v409_v58 = vrot.slane %v404_v56, %v4424_v55  ;;  %v413_v59 = vrot.slane %v404_v56, %v4427_v57  ;;  %v421_v3 = vrot.slane %v404_v56, %v4431_v60  ;;  %v417_v16 = vrot.slane %v404_v56, %v4435_v9  ;;  %v3693_v53 = vld [vmem:[%s4354_s14 + $0x28] ss:$16 sps:$4 sm:$0xff]   ;;  %v3699_v54 = vld [vmem:[%s4341_s21 + $0x240] ss:$16 sps:$4 sm:$0xff]   ;;  %v3701_v56 = vld [vmem:[%s4341_s21 + $0x244] ss:$16 sps:$4 sm:$0xff]  }
  0xa5   : > { %597 = vmatpush1.bf16.msra.mxu0 %v3611_v21  ;;  %638 = vmatpush1.bf16.msra.mxu1 %v3626_v27  ;;  %v3657_v21 = vld [vmem:[%s4341_s21 + $0x128] ss:$16 sps:$4 sm:$0xff]   ;;  %s3051_s30 = sshll.u32 %s4731_s18, 1 }
  0xa6   : > { %598 = vmatprep.subr.bf16.mxu0 %v3615_v22  ;;  %639 = vmatprep.subr.bf16.mxu1 %v3627_v28  ;;  %v3665_v22 = vld [vmem:[%s4341_s21 + $0x14c] ss:$16 sps:$4 sm:$0xff]   ;;  %v3675_v27 = vld [vmem:[%s4341_s21 + $0x188] ss:$16 sps:$4 sm:$0xff]   ;;  %s4491_s6 = scalar_lea.vmem %s4716_s5, %s3051_s30 }
  0xa7   : > { %v3680_v28 = vld [vmem:[%s4341_s21 + $0x1ac] ss:$16 sps:$4 sm:$0xff]  }
  0xa9   : > { %599 = vmatpush1.bf16.msra.mxu0 %v3617_v25  ;;  %640 = vmatpush1.bf16.msra.mxu1 %v3629_v30  ;;  %v3669_v25 = vld [vmem:[%s4341_s21 + $0x168] ss:$16 sps:$4 sm:$0xff]   ;;  %v3683_v30 = vld [vmem:[%s4341_s21 + $0x1cc] ss:$16 sps:$4 sm:$0xff]  }
  0xaa   : > { %600 = vmatprep.subr.bf16.mxu0 %v3621_v26  ;;  %641 = vmatprep.subr.bf16.mxu1 %v3630_v31  ;;  %v3677_v26 = vld [vmem:[%s4341_s21 + $0x18c] ss:$16 sps:$4 sm:$0xff]   ;;  %v3681_v31 = vld [vmem:[%s4341_s21 + $0x1c8] ss:$16 sps:$4 sm:$0xff]  }
  0xad   : > { %601 = vmatpush1.bf16.msra.mxu0 %v3623_v29  ;;  %642 = vmatpush1.bf16.msra.mxu1 %v3632_v34  ;;  %v3678_v29 = vld [vmem:[%s4341_s21 + $0x1a8] ss:$16 sps:$4 sm:$0xff]  }
  0xae   : > { %703 = vmatprep.subr.bf16.mxu0 %v3635_v32  ;;  %1007 = vmatprep.subr.bf16.mxu1 %v3638_v36  ;;  %v3686_v32 = vld [vmem:[%s4341_s21 + $0x1ec] ss:$16 sps:$4 sm:$0xff]   ;;  %v3684_v34 = vld [vmem:[%s4341_s21 + $0x1e8] ss:$16 sps:$4 sm:$0xff]   ;;  %v3687_v36 = vld [vmem:[%s4354_s14 + $0x20] ss:$16 sps:$4 sm:$0xff]  }
  0xb0   : > { %619 = vmatmul.mubr.bf16.vlgmr.msra.gmra.mrb[0].mxu0 %v4399_v33  ;;  %660 = vmatmul.mubr.bf16.vlgmr.msra.gmra.mrb[0].mxu1 %v4399_v33 }
  0xb1   : > { %1039 = vmatprep.mubr.bf16.mxu1 %v4107_v0  ;;  %1008 = vmatpush1.bf16.msra.mxu1 %v3636_v37  ;;  %v4460_v37 = vld [vmem:[%s4348_s10 + $0x4] sm:$0xf] }
  0xb2   : > { %1009 = vmatprep.subr.bf16.mxu1 %v3644_v38 }
  0xb5   : > { %1010 = vmatpush1.bf16.msra.mxu1 %v3642_v40 }
  0xb6   : > { %704 = vmatpush1.bf16.xpose.msra.mxu0 %v3633_v35  ;;  %1011 = vmatprep.subr.bf16.mxu1 %v3647_v42  ;;  %v3689_v35 = vld [vmem:[%s4354_s14 + $0x24] ss:$16 sps:$4 sm:$0xff]  }
  0xb7   : > { %743 = vmatprep.subr.bf16.mxu0 %v3641_v39  ;;  %v834_v39 = vrot.slane %v4460_v37, %v4427_v57 }
  0xb9   : > { %1012 = vmatpush1.bf16.msra.mxu1 %v3645_v41  ;;  %v830_v41 = vrot.slane %v4460_v37, %v4424_v55 }
  0xba   : > { %1013 = vmatprep.subr.bf16.mxu1 %v3650_v43 }
  0xbd   : > { %1014 = vmatpush1.bf16.msra.mxu1 %v3648_v44 }
  0xbe   : > { %1015 = vmatprep.subr.bf16.mxu1 %v3656_v45 }
  0xc1   : > { %1016 = vmatpush1.bf16.msra.mxu1 %v3654_v46  ;;  %v3692_v46 = vld [vmem:[%s4341_s21 + $0x204] ss:$16 sps:$4 sm:$0xff]  }
  0xc2   : > { %1017 = vmatprep.subr.bf16.mxu1 %v3662_v48  ;;  %v3690_v48 = vld [vmem:[%s4341_s21 + $0x200] ss:$16 sps:$4 sm:$0xff]  }
  0xc5   : > { %1018 = vmatpush1.bf16.msra.mxu1 %v3660_v47 }
  0xc6   : > { %1019 = vmatprep.subr.bf16.mxu1 %v3668_v50  ;;  %v3698_v50 = vld [vmem:[%s4341_s21 + $0x224] ss:$16 sps:$4 sm:$0xff]  }
  0xc9   : > { %1020 = vmatpush1.bf16.msra.mxu1 %v3666_v49 }
  0xca   : > { %1021 = vmatprep.subr.bf16.mxu1 %v3674_v52  ;;  %v3695_v52 = vld [vmem:[%s4354_s14 + $0x2c] ss:$16 sps:$4 sm:$0xff]  }
  0xcd   : > { %1022 = vmatpush1.bf16.msra.mxu1 %v3672_v51  ;;  %v3696_v51 = vld [vmem:[%s4341_s21 + $0x220] ss:$16 sps:$4 sm:$0xff]  }
  0xce   : > { %1126 = vmatprep.subr.bf16.mxu1 %v3689_v35  ;;  %v3723_v35 = vld [vmem:[%s4341_s21 + $0x268] ss:$16 sps:$4 sm:$0xff]  }
  0xd0   : > { %1040 = vmatmul.mubr.bf16.vlgmr.msra.gmra.mrb[4].mxu1 %v4399_v33 }
  0xd6   : > { %1127 = vmatpush1.bf16.xpose.msra.mxu1 %v3687_v36  ;;  %v3731_v36 = vld [vmem:[%s4341_s21 + $0x28c] ss:$16 sps:$4 sm:$0xff]  }
  0xd7   : > { %1166 = vmatprep.subr.bf16.mxu1 %v3695_v52 }
 0x183   : > { %v620_v61 = vpop.f32.mrb[0].mxu0  ;;  %v661_v7 = vpop.f32.mrb[0].mxu1 }
 0x184   : > { %v621_v62 = vadd.f32 %v620_v61, %v409_v58  ;;  %v622_v63 = vpop.f32.mrb[1].mxu0  ;;  %v663_v10 = vpop.f32.mrb[1].mxu1  ;;  %v662_v17 = vadd.f32 %v661_v7, %v417_v16  ;;  %v3704_v58 = vld [vmem:[%s4341_s21 + $0x264] ss:$16 sps:$4 sm:$0xff]   ;;  %v3707_v61 = vld [vmem:[%s4341_s21 + $0x20c] ss:$16 sps:$4 sm:$0xff]  }
 0x185   : > { %v623_v1 = vadd.f32 %v622_v63, %v413_v59  ;;  %v624_v2 = vpop.f32.mrb[2].mxu0  ;;  %v664_v12 = vadd.f32 %v663_v10, %v421_v3  ;;  %v665_v13 = vpop.f32.mrb[2].mxu1  ;;  %v3702_v59 = vld [vmem:[%s4341_s21 + $0x260] ss:$16 sps:$4 sm:$0xff]  }
 0x186   : > { %v625_v4 = vpop.f32.mrb[3].mxu0  ;;  %v668_v8 = vpack.c.bf16 %v621_v62, %v621_v62  ;;  %v666_v14 = vpop.f32.mrb[3].mxu1  ;;  %v670_v19 = vpack.c.bf16 %v662_v17, %v662_v17  ;;  %v3710_v62 = vld [vmem:[%s4341_s21 + $0x284] ss:$16 sps:$4 sm:$0xff]   ;;  %v3708_v63 = vld [vmem:[%s4341_s21 + $0x280] ss:$16 sps:$4 sm:$0xff]  }
 0x187   : > { %v669_v5 = vpack.c.bf16 %v623_v1, %v623_v1  ;;  %v671_v15 = vpack.c.bf16 %v664_v12, %v664_v12  ;;  %v3714_v1 = vld [vmem:[%s4341_s21 + $0x2a0] ss:$16 sps:$4 sm:$0xff]   ;;  %v3716_v2 = vld [vmem:[%s4341_s21 + $0x2a4] ss:$16 sps:$4 sm:$0xff]  }
 0x188   : > { %v3720_v3 = vld [vmem:[%s4341_s21 + $0x2c0] ss:$16 sps:$4 sm:$0xff]   ;;  %v3722_v4 = vld [vmem:[%s4341_s21 + $0x2c4] ss:$16 sps:$4 sm:$0xff]  }
 0x189   : > { %735 = vmatprep.mubr.bf16.mxu0 %v669_v5  ;;  %v3726_v5 = vld [vmem:[%s4341_s21 + $0x2e0] ss:$16 sps:$4 sm:$0xff]  }
 0x18a   : > { %736 = vmatmul.mubr.bf16.vlgmr.msra.gmra.mrb[4].mxu0 %v668_v8  ;;  %v3084_v7 = vld [vmem:[%s4356_s12] ss:$0 sm:$0xff] }
 0x18b   : > { %744 = vmatpush1.bf16.xpose.msra.mxu0 %v3639_v6  ;;  %775 = vmatprep.mubr.bf16.mxu0 %v671_v15  ;;  %v3728_v6 = vld [vmem:[%s4341_s21 + $0x2e4] ss:$16 sps:$4 sm:$0xff]  }
 0x18c   : > { %1048 = vmatprep.subr.bf16.mxu0 %v3653_v11 }
 0x196   : > { %776 = vmatmul.mubr.bf16.vlgmr.msra.gmra.mrb[4].mxu0 %v670_v19  ;;  %v842_v19 = vrot.slane %v4460_v37, %v4431_v60 }
 0x197   : > { %1049 = vmatpush1.bf16.msra.mxu0 %v3651_v18  ;;  %1080 = vmatprep.mubr.bf16.mxu0 %v4107_v0  ;;  %v838_v18 = vrot.slane %v4460_v37, %v4435_v9  ;;  %v3729_v37 = vld [vmem:[%s4341_s21 + $0x288] ss:$16 sps:$4 sm:$0xff]  }
 0x198   : > { %1050 = vmatprep.subr.bf16.mxu0 %v3659_v20 }
 0x19b   : > { %1051 = vmatpush1.bf16.msra.mxu0 %v3657_v21 }
 0x19c   : > { %1052 = vmatprep.subr.bf16.mxu0 %v3665_v22 }
 0x19f   : > { %1053 = vmatpush1.bf16.msra.mxu0 %v3663_v23 }
 0x1a0   : > { %1054 = vmatprep.subr.bf16.mxu0 %v3671_v24 }
 0x1a3   : > { %1055 = vmatpush1.bf16.msra.mxu0 %v3669_v25  ;;  %v1041_v38 = vpop.f32.mrb[4].mxu1 }
 0x1a4   : > { %1056 = vmatprep.subr.bf16.mxu0 %v3677_v26  ;;  %v1043_v40 = vpop.f32.mrb[5].mxu1  ;;  %v1042_v45 = vadd.f32 %v1041_v38, %v830_v41  ;;  %v3734_v38 = vld [vmem:[%s4341_s21 + $0x2ac] ss:$16 sps:$4 sm:$0xff]   ;;  %v3735_v41 = vld [vmem:[%s4341_s21 + $0x2c8] ss:$16 sps:$4 sm:$0xff]  }
 0x1a5   : > { %v1045_v42 = vpop.f32.mrb[6].mxu1  ;;  %v1044_v43 = vadd.f32 %v1043_v40, %v834_v39  ;;  %v3732_v39 = vld [vmem:[%s4341_s21 + $0x2a8] ss:$16 sps:$4 sm:$0xff]   ;;  %v3737_v40 = vld [vmem:[%s4341_s21 + $0x2cc] ss:$16 sps:$4 sm:$0xff]  }
 0x1a6   : > { %v1046_v44 = vpop.f32.mrb[7].mxu1  ;;  %v1089_v49 = vpack.c.bf16 %v1042_v45, %v1042_v45  ;;  %v3740_v42 = vld [vmem:[%s4341_s21 + $0x2ec] ss:$16 sps:$4 sm:$0xff]   ;;  %v3741_v45 = vld [vmem:[%s4354_s14 + $0x40] ss:$16 sps:$4 sm:$0xff]  }
 0x1a7   : > { %1057 = vmatpush1.bf16.msra.mxu0 %v3675_v27  ;;  %v1090_v47 = vpack.c.bf16 %v1044_v43, %v1044_v43  ;;  %v3705_v27 = vld [vmem:[%s4341_s21 + $0x208] ss:$16 sps:$4 sm:$0xff]   ;;  %v3743_v44 = vld [vmem:[%s4354_s14 + $0x44] ss:$16 sps:$4 sm:$0xff]  }
 0x1a8   : > { %1058 = vmatprep.subr.bf16.mxu0 %v3680_v28  ;;  %v3738_v43 = vld [vmem:[%s4341_s21 + $0x2e8] ss:$16 sps:$4 sm:$0xff]  }
 0x1a9   : > { %1158 = vmatprep.mubr.bf16.mxu1 %v1090_v47 }
 0x1aa   : > { %1159 = vmatmul.mubr.bf16.vlgmr.msra.gmra.mrb[8].mxu1 %v1089_v49 }
 0x1ab   : > { %1059 = vmatpush1.bf16.msra.mxu0 %v3678_v29  ;;  %1167 = vmatpush1.bf16.xpose.msra.mxu1 %v3693_v53  ;;  %v3713_v29 = vld [vmem:[%s4341_s21 + $0x22c] ss:$16 sps:$4 sm:$0xff]  }
 0x1ac   : > { %1060 = vmatprep.subr.bf16.mxu0 %v3683_v30  ;;  %1471 = vmatprep.subr.bf16.mxu1 %v3707_v61  ;;  %v3711_v30 = vld [vmem:[%s4341_s21 + $0x228] ss:$16 sps:$4 sm:$0xff]  }
 0x1af   : > { %1061 = vmatpush1.bf16.msra.mxu0 %v3681_v31  ;;  %v3719_v31 = vld [vmem:[%s4341_s21 + $0x24c] ss:$16 sps:$4 sm:$0xff]  }
 0x1b0   : > { %1062 = vmatprep.subr.bf16.mxu0 %v3686_v32  ;;  %v3717_v32 = vld [vmem:[%s4341_s21 + $0x248] ss:$16 sps:$4 sm:$0xff]  }
 0x1b3   : > { %1063 = vmatpush1.bf16.msra.mxu0 %v3684_v34  ;;  %v3725_v34 = vld [vmem:[%s4341_s21 + $0x26c] ss:$16 sps:$4 sm:$0xff]  }
 0x1b4   : > { %1430 = vmatprep.subr.bf16.mxu0 %v3692_v46  ;;  %v4520_v46 = vld [vmem:[%s4348_s10 + $0x8] sm:$0xf] }
 0x1b6   : > { %1081 = vmatmul.mubr.bf16.vlgmr.msra.gmra.mrb[8].mxu0 %v4399_v33 }
 0x1b7   : > { %1462 = vmatprep.mubr.bf16.mxu0 %v4107_v0  ;;  %1431 = vmatpush1.bf16.msra.mxu0 %v3690_v48  ;;  %v1257_v48 = vrot.slane %v4520_v46, %v4427_v57 }
 0x1b8   : > { %1432 = vmatprep.subr.bf16.mxu0 %v3698_v50  ;;  %v1253_v50 = vrot.slane %v4520_v46, %v4424_v55 }
 0x1bb   : > { %1433 = vmatpush1.bf16.msra.mxu0 %v3696_v51 }
 0x1bc   : > { %1434 = vmatprep.subr.bf16.mxu0 %v3701_v56  ;;  %v3746_v56 = vld [vmem:[%s4341_s21 + $0x304] ss:$16 sps:$4 sm:$0xff]  }
 0x1bf   : > { %1435 = vmatpush1.bf16.msra.mxu0 %v3699_v54 }
 0x1c0   : > { %1436 = vmatprep.subr.bf16.mxu0 %v3704_v58 }
 0x1c3   : > { %1437 = vmatpush1.bf16.msra.mxu0 %v3702_v59  ;;  %v3744_v59 = vld [vmem:[%s4341_s21 + $0x300] ss:$16 sps:$4 sm:$0xff]  }
 0x1c4   : > { %1438 = vmatprep.subr.bf16.mxu0 %v3710_v62  ;;  %v3752_v62 = vld [vmem:[%s4341_s21 + $0x324] ss:$16 sps:$4 sm:$0xff]  }
 0x1c7   : > { %1439 = vmatpush1.bf16.msra.mxu0 %v3708_v63  ;;  %v3750_v63 = vld [vmem:[%s4341_s21 + $0x320] ss:$16 sps:$4 sm:$0xff]  }
 0x1c8   : > { %1440 = vmatprep.subr.bf16.mxu0 %v3716_v2  ;;  %v3747_v2 = vld [vmem:[%s4354_s14 + $0x48] ss:$16 sps:$4 sm:$0xff]  }
 0x1cb   : > { %1441 = vmatpush1.bf16.msra.mxu0 %v3714_v1  ;;  %v3749_v1 = vld [vmem:[%s4354_s14 + $0x4c] ss:$16 sps:$4 sm:$0xff]  }
 0x1cc   : > { %1442 = vmatprep.subr.bf16.mxu0 %v3722_v4  ;;  %v3755_v4 = vld [vmem:[%s4341_s21 + $0x344] ss:$16 sps:$4 sm:$0xff]  }
 0x1cf   : > { %1443 = vmatpush1.bf16.msra.mxu0 %v3720_v3  ;;  %v3753_v3 = vld [vmem:[%s4341_s21 + $0x340] ss:$16 sps:$4 sm:$0xff]  }
 0x1d0   : > { %1444 = vmatprep.subr.bf16.mxu0 %v3728_v6  ;;  %v3756_v6 = vld [vmem:[%s4341_s21 + $0x360] ss:$16 sps:$4 sm:$0xff]  }
 0x1d3   : > { %1445 = vmatpush1.bf16.msra.mxu0 %v3726_v5  ;;  %v3758_v5 = vld [vmem:[%s4341_s21 + $0x364] ss:$16 sps:$4 sm:$0xff]  }
 0x1d4   : > { %1549 = vmatprep.subr.bf16.mxu0 %v3743_v44  ;;  %v3785_v44 = vld [vmem:[%s4341_s21 + $0x38c] ss:$16 sps:$4 sm:$0xff]  }
 0x1d6   : > { %1463 = vmatmul.mubr.bf16.vlgmr.msra.gmra.mrb[12].mxu0 %v4399_v33 }
 0x1dc   : > { %1550 = vmatpush1.bf16.xpose.msra.mxu0 %v3741_v45  ;;  %v3783_v45 = vld [vmem:[%s4341_s21 + $0x388] ss:$16 sps:$4 sm:$0xff]  }
 0x1dd   : > { %1589 = vmatprep.subr.bf16.mxu0 %v3749_v1 }
 0x269   : > { %v777_v8 = vpop.f32.mrb[4].mxu0 }
 0x26a   : > { %v3487_v10 = vadd.f32 %v3084_v7, %v777_v8  ;;  %v779_v11 = vpop.f32.mrb[5].mxu0  ;;  %v3761_v7 = vld [vmem:[%s4341_s21 + $0x30c] ss:$16 sps:$4 sm:$0xff]   ;;  %v3764_v8 = vld [vmem:[%s4341_s21 + $0x384] ss:$16 sps:$4 sm:$0xff]  }
 0x26b   : > { %v780_v12 = vpop.f32.mrb[6].mxu0  ;;  %v3768_v11 = vld [vmem:[%s4341_s21 + $0x3a0] ss:$16 sps:$4 sm:$0xff]  }
 0x26c   : > { %v3089_v13 = vmul.f32 -1.442695, %v3487_v10  ;;  %v781_v14 = vpop.f32.mrb[7].mxu0  ;;  %v3762_v10 = vld [vmem:[%s4341_s21 + $0x380] ss:$16 sps:$4 sm:$0xff]  }
 0x26d   : > { %v3770_v12 = vld [vmem:[%s4341_s21 + $0x3a4] ss:$16 sps:$4 sm:$0xff]  }
 0x26e   : > { %3909 = vpow2.f32 %v3089_v13  ;;  %v3774_v13 = vld [vmem:[%s4341_s21 + $0x3c0] ss:$16 sps:$4 sm:$0xff]   ;;  %v3776_v14 = vld [vmem:[%s4341_s21 + $0x3c4] ss:$16 sps:$4 sm:$0xff]  }
 0x278   : > { %v3910_v15 = vpop.eup %3909 }
 0x279   : > { %v786_v16 = vadd.f32 1.0, %v3910_v15  ;;  %v3780_v15 = vld [vmem:[%s4341_s21 + $0x3e0] ss:$16 sps:$4 sm:$0xff]  }
 0x27b   : > { %3911 = vrcp.f32 %v786_v16  ;;  %v3782_v16 = vld [vmem:[%s4341_s21 + $0x3e4] ss:$16 sps:$4 sm:$0xff]  }
 0x285   : > { %v3912_v17 = vpop.eup %3911 }
 0x286   : > { %790 = vst.msk [vmem:[%s4491_s6] sm:$0x3] %vm789_vm0, %v3912_v17  ;;  %v3160_v17 = vld [vmem:[%s4356_s12 + $0x1] ss:$0 sm:$0xff] }
 0x289   : > { %v1082_v20 = vpop.f32.mrb[8].mxu0 }
 0x28a   : > { %v1083_v21 = vadd.f32 %v1082_v20, %v838_v18  ;;  %v1084_v22 = vpop.f32.mrb[9].mxu0 }
 0x28b   : > { %v1085_v23 = vadd.f32 %v1084_v22, %v842_v19  ;;  %v1086_v24 = vpop.f32.mrb[10].mxu0 }
 0x28c   : > { %v1087_v25 = vpop.f32.mrb[11].mxu0  ;;  %v1091_v28 = vpack.c.bf16 %v1083_v21, %v1083_v21 }
 0x28d   : > { %v1092_v26 = vpack.c.bf16 %v1085_v23, %v1085_v23 }
 0x28f   : > { %1198 = vmatprep.mubr.bf16.mxu1 %v1092_v26 }
 0x290   : > { %1199 = vmatmul.mubr.bf16.vlgmr.msra.gmra.mrb[8].mxu1 %v1091_v28 }
 0x291   : > { %1472 = vmatpush1.bf16.msra.mxu1 %v3705_v27  ;;  %1503 = vmatprep.mubr.bf16.mxu1 %v4107_v0  ;;  %v1265_v27 = vrot.slane %v4520_v46, %v4431_v60 }
 0x292   : > { %1473 = vmatprep.subr.bf16.mxu1 %v3713_v29 }
 0x295   : > { %1474 = vmatpush1.bf16.msra.mxu1 %v3711_v30 }
 0x296   : > { %1475 = vmatprep.subr.bf16.mxu1 %v3719_v31 }
 0x299   : > { %1476 = vmatpush1.bf16.msra.mxu1 %v3717_v32 }
 0x29a   : > { %1477 = vmatprep.subr.bf16.mxu1 %v3725_v34 }
 0x29d   : > { %1478 = vmatpush1.bf16.msra.mxu1 %v3723_v35 }
 0x29e   : > { %1479 = vmatprep.subr.bf16.mxu1 %v3731_v36  ;;  %v3759_v36 = vld [vmem:[%s4341_s21 + $0x308] ss:$16 sps:$4 sm:$0xff]  }
 0x2a1   : > { %1480 = vmatpush1.bf16.msra.mxu1 %v3729_v37 }
 0x2a2   : > { %1481 = vmatprep.subr.bf16.mxu1 %v3734_v38  ;;  %v3767_v38 = vld [vmem:[%s4341_s21 + $0x32c] ss:$16 sps:$4 sm:$0xff]  }
 0x2a5   : > { %1482 = vmatpush1.bf16.msra.mxu1 %v3732_v39  ;;  %v3765_v39 = vld [vmem:[%s4341_s21 + $0x328] ss:$16 sps:$4 sm:$0xff]  }
 0x2a6   : > { %1483 = vmatprep.subr.bf16.mxu1 %v3737_v40  ;;  %v3773_v40 = vld [vmem:[%s4341_s21 + $0x34c] ss:$16 sps:$4 sm:$0xff]  }
 0x2a9   : > { %1484 = vmatpush1.bf16.msra.mxu1 %v3735_v41  ;;  %v1464_v47 = vpop.f32.mrb[12].mxu0  ;;  %v3771_v41 = vld [vmem:[%s4341_s21 + $0x348] ss:$16 sps:$4 sm:$0xff]  }
 0x2aa   : > { %1485 = vmatprep.subr.bf16.mxu1 %v3740_v42  ;;  %v1466_v49 = vpop.f32.mrb[13].mxu0  ;;  %v1465_v54 = vadd.f32 %v1464_v47, %v1253_v50  ;;  %v3779_v42 = vld [vmem:[%s4341_s21 + $0x36c] ss:$16 sps:$4 sm:$0xff]   ;;  %v3786_v47 = vld [vmem:[%s4341_s21 + $0x3a8] ss:$16 sps:$4 sm:$0xff]  }
 0x2ab   : > { %v1468_v51 = vpop.f32.mrb[14].mxu0  ;;  %v1467_v52 = vadd.f32 %v1466_v49, %v1257_v48  ;;  %v3791_v48 = vld [vmem:[%s4341_s21 + $0x3cc] ss:$16 sps:$4 sm:$0xff]   ;;  %v3789_v49 = vld [vmem:[%s4341_s21 + $0x3c8] ss:$16 sps:$4 sm:$0xff]  }
 0x2ac   : > { %v1469_v53 = vpop.f32.mrb[15].mxu0  ;;  %v1512_v61 = vpack.c.bf16 %v1465_v54, %v1465_v54  ;;  %v3794_v50 = vld [vmem:[%s4341_s21 + $0x3ec] ss:$16 sps:$4 sm:$0xff]   ;;  %v3792_v51 = vld [vmem:[%s4341_s21 + $0x3e8] ss:$16 sps:$4 sm:$0xff]  }
 0x2ad   : > { %1486 = vmatpush1.bf16.msra.mxu1 %v3738_v43  ;;  %v1513_v58 = vpack.c.bf16 %v1467_v52, %v1467_v52  ;;  %v3777_v43 = vld [vmem:[%s4341_s21 + $0x368] ss:$16 sps:$4 sm:$0xff]   ;;  %v4572_v52 = vld [vmem:[%s4711_s0] sm:$0x1]  ;;  %v3797_v53 = vld [vmem:[%s4354_s14 + $0x64] ss:$16 sps:$4 sm:$0xff]  }
 0x2ae   : > { %1853 = vmatprep.subr.bf16.mxu1 %v3746_v56  ;;  %v3795_v54 = vld [vmem:[%s4354_s14 + $0x60] ss:$16 sps:$4 sm:$0xff]   ;;  %v4579_v56 = vld [vmem:[%s4348_s10 + $0xc] sm:$0xf] }
 0x2af   : > { %1581 = vmatprep.mubr.bf16.mxu0 %v1513_v58 }
 0x2b0   : > { %1504 = vmatmul.mubr.bf16.vlgmr.msra.gmra.mrb[12].mxu1 %v4399_v33  ;;  %1582 = vmatmul.mubr.bf16.vlgmr.msra.gmra.mrb[16].mxu0 %v1512_v61 }
 0x2b1   : > { %1885 = vmatprep.mubr.bf16.mxu1 %v4107_v0  ;;  %1854 = vmatpush1.bf16.msra.mxu1 %v3744_v59  ;;  %v1680_v59 = vrot.slane %v4579_v56, %v4427_v57 }
 0x2b2   : > { %1855 = vmatprep.subr.bf16.mxu1 %v3752_v62  ;;  %1590 = vmatpush1.bf16.xpose.msra.mxu0 %v3747_v2  ;;  %v1676_v62 = vrot.slane %v4579_v56, %v4424_v55 }
 0x2b3   : > { %1894 = vmatprep.subr.bf16.mxu0 %v3761_v7 }
 0x2b5   : > { %1856 = vmatpush1.bf16.msra.mxu1 %v3750_v63 }
 0x2b6   : > { %1857 = vmatprep.subr.bf16.mxu1 %v3755_v4  ;;  %v3800_v4 = vld [vmem:[%s4341_s21 + $0x404] ss:$16 sps:$4 sm:$0xff]  }
 0x2b9   : > { %1858 = vmatpush1.bf16.msra.mxu1 %v3753_v3 }
 0x2ba   : > { %1859 = vmatprep.subr.bf16.mxu1 %v3758_v5 }
 0x2bd   : > { %1860 = vmatpush1.bf16.msra.mxu1 %v3756_v6  ;;  %v3798_v6 = vld [vmem:[%s4341_s21 + $0x400] ss:$16 sps:$4 sm:$0xff]  }
 0x2be   : > { %1861 = vmatprep.subr.bf16.mxu1 %v3764_v8  ;;  %v3806_v8 = vld [vmem:[%s4341_s21 + $0x424] ss:$16 sps:$4 sm:$0xff]  }
 0x2c1   : > { %1862 = vmatpush1.bf16.msra.mxu1 %v3762_v10  ;;  %v3804_v10 = vld [vmem:[%s4341_s21 + $0x420] ss:$16 sps:$4 sm:$0xff]  }
 0x2c2   : > { %1863 = vmatprep.subr.bf16.mxu1 %v3770_v12  ;;  %v3801_v12 = vld [vmem:[%s4354_s14 + $0x68] ss:$16 sps:$4 sm:$0xff]  }
 0x2c5   : > { %1864 = vmatpush1.bf16.msra.mxu1 %v3768_v11  ;;  %v3803_v11 = vld [vmem:[%s4354_s14 + $0x6c] ss:$16 sps:$4 sm:$0xff]  }
 0x2c6   : > { %1865 = vmatprep.subr.bf16.mxu1 %v3776_v14  ;;  %v3809_v14 = vld [vmem:[%s4341_s21 + $0x444] ss:$16 sps:$4 sm:$0xff]  }
 0x2c9   : > { %1866 = vmatpush1.bf16.msra.mxu1 %v3774_v13  ;;  %v3807_v13 = vld [vmem:[%s4341_s21 + $0x440] ss:$16 sps:$4 sm:$0xff]  }
 0x2ca   : > { %1867 = vmatprep.subr.bf16.mxu1 %v3782_v16  ;;  %v3810_v16 = vld [vmem:[%s4341_s21 + $0x460] ss:$16 sps:$4 sm:$0xff]  }
 0x2cd   : > { %1868 = vmatpush1.bf16.msra.mxu1 %v3780_v15  ;;  %v3812_v15 = vld [vmem:[%s4341_s21 + $0x464] ss:$16 sps:$4 sm:$0xff]  }
 0x2ce   : > { %1972 = vmatprep.subr.bf16.mxu1 %v3797_v53  ;;  %v3831_v53 = vld [vmem:[%s4341_s21 + $0x468] ss:$16 sps:$4 sm:$0xff]  }
 0x2d0   : > { %1886 = vmatmul.mubr.bf16.vlgmr.msra.gmra.mrb[16].mxu1 %v4399_v33  ;;  %v1261_v33 = vrot.slane %v4520_v46, %v4435_v9  ;;  %v3788_v46 = vld [vmem:[%s4341_s21 + $0x3ac] ss:$16 sps:$4 sm:$0xff]  }
 0x2d6   : > { %1973 = vmatpush1.bf16.xpose.msra.mxu1 %v3795_v54  ;;  %v3839_v54 = vld [vmem:[%s4341_s21 + $0x48c] ss:$16 sps:$4 sm:$0xff]  }
 0x2d7   : > { %2012 = vmatprep.subr.bf16.mxu1 %v3803_v11 }
 0x363   : > { %v1200_v18 = vpop.f32.mrb[8].mxu1 }
 0x364   : > { %v3488_v19 = vadd.f32 %v3160_v17, %v1200_v18  ;;  %v1202_v20 = vpop.f32.mrb[9].mxu1  ;;  %v3815_v17 = vld [vmem:[%s4341_s21 + $0x40c] ss:$16 sps:$4 sm:$0xff]   ;;  %v3818_v18 = vld [vmem:[%s4341_s21 + $0x484] ss:$16 sps:$4 sm:$0xff]  }
 0x365   : > { %v1203_v21 = vpop.f32.mrb[10].mxu1  ;;  %v3822_v20 = vld [vmem:[%s4341_s21 + $0x4a0] ss:$16 sps:$4 sm:$0xff]  }
 0x366   : > { %v3165_v22 = vmul.f32 -1.442695, %v3488_v19  ;;  %v1204_v23 = vpop.f32.mrb[11].mxu1  ;;  %v3816_v19 = vld [vmem:[%s4341_s21 + $0x480] ss:$16 sps:$4 sm:$0xff]  }
 0x367   : > { %v3824_v21 = vld [vmem:[%s4341_s21 + $0x4a4] ss:$16 sps:$4 sm:$0xff]  }
 0x368   : > { %3913 = vpow2.f32 %v3165_v22  ;;  %v3828_v22 = vld [vmem:[%s4341_s21 + $0x4c0] ss:$16 sps:$4 sm:$0xff]   ;;  %v3830_v23 = vld [vmem:[%s4341_s21 + $0x4c4] ss:$16 sps:$4 sm:$0xff]  }
 0x372   : > { %v3914_v24 = vpop.eup %3913 }
 0x373   : > { %v1209_v25 = vadd.f32 1.0, %v3914_v24  ;;  %v3834_v24 = vld [vmem:[%s4341_s21 + $0x4e0] ss:$16 sps:$4 sm:$0xff]  }
 0x375   : > { %3915 = vrcp.f32 %v1209_v25  ;;  %v3836_v25 = vld [vmem:[%s4341_s21 + $0x4e4] ss:$16 sps:$4 sm:$0xff]  }
 0x37f   : > { %v3916_v26 = vpop.eup %3915 }
 0x380   : > { %3166 = vst.msk [vmem:[%s4491_s6 + $0x2] sm:$0x3] %vm789_vm0, %v3916_v26  ;;  %v3237_v26 = vld [vmem:[%s4356_s12 + $0x2] ss:$0 sm:$0xff] }
 0x383   : > { %v1505_v28 = vpop.f32.mrb[12].mxu1 }
 0x384   : > { %v1506_v29 = vadd.f32 %v1505_v28, %v1261_v33  ;;  %v1507_v30 = vpop.f32.mrb[13].mxu1 }
 0x385   : > { %v1508_v31 = vadd.f32 %v1507_v30, %v1265_v27  ;;  %v1509_v32 = vpop.f32.mrb[14].mxu1 }
 0x386   : > { %v1510_v34 = vpop.f32.mrb[15].mxu1  ;;  %v1514_v37 = vpack.c.bf16 %v1506_v29, %v1506_v29 }
 0x387   : > { %v1515_v35 = vpack.c.bf16 %v1508_v31, %v1508_v31 }
 0x389   : > { %1621 = vmatprep.mubr.bf16.mxu0 %v1515_v35 }
 0x38a   : > { %1622 = vmatmul.mubr.bf16.vlgmr.msra.gmra.mrb[16].mxu0 %v1514_v37  ;;  %v1688_v37 = vrot.slane %v4579_v56, %v4431_v60 }
 0x38b   : > { %1895 = vmatpush1.bf16.msra.mxu0 %v3759_v36  ;;  %1926 = vmatprep.mubr.bf16.mxu0 %v4107_v0  ;;  %v1684_v36 = vrot.slane %v4579_v56, %v4435_v9  ;;  %v3837_v56 = vld [vmem:[%s4341_s21 + $0x488] ss:$16 sps:$4 sm:$0xff]  }
 0x38c   : > { %1896 = vmatprep.subr.bf16.mxu0 %v3767_v38 }
 0x38f   : > { %1897 = vmatpush1.bf16.msra.mxu0 %v3765_v39 }
 0x390   : > { %1898 = vmatprep.subr.bf16.mxu0 %v3773_v40 }
 0x393   : > { %1899 = vmatpush1.bf16.msra.mxu0 %v3771_v41 }
 0x394   : > { %1900 = vmatprep.subr.bf16.mxu0 %v3779_v42 }
 0x397   : > { %1901 = vmatpush1.bf16.msra.mxu0 %v3777_v43 }
 0x398   : > { %1902 = vmatprep.subr.bf16.mxu0 %v3785_v44 }
 0x39b   : > { %1903 = vmatpush1.bf16.msra.mxu0 %v3783_v45  ;;  %v3813_v45 = vld [vmem:[%s4341_s21 + $0x408] ss:$16 sps:$4 sm:$0xff]  }
 0x39c   : > { %1904 = vmatprep.subr.bf16.mxu0 %v3788_v46 }
 0x39f   : > { %1905 = vmatpush1.bf16.msra.mxu0 %v3786_v47  ;;  %v3821_v47 = vld [vmem:[%s4341_s21 + $0x42c] ss:$16 sps:$4 sm:$0xff]  }
 0x3a0   : > { %1906 = vmatprep.subr.bf16.mxu0 %v3791_v48  ;;  %v3819_v48 = vld [vmem:[%s4341_s21 + $0x428] ss:$16 sps:$4 sm:$0xff]  }
 0x3a3   : > { %1907 = vmatpush1.bf16.msra.mxu0 %v3789_v49  ;;  %v1887_v58 = vpop.f32.mrb[16].mxu1  ;;  %v3827_v49 = vld [vmem:[%s4341_s21 + $0x44c] ss:$16 sps:$4 sm:$0xff]  }
 0x3a4   : > { %1908 = vmatprep.subr.bf16.mxu0 %v3794_v50  ;;  %v1889_v61 = vpop.f32.mrb[17].mxu1  ;;  %v1888_v3 = vadd.f32 %v1887_v58, %v1676_v62  ;;  %v3825_v50 = vld [vmem:[%s4341_s21 + $0x448] ss:$16 sps:$4 sm:$0xff]   ;;  %v3842_v58 = vld [vmem:[%s4341_s21 + $0x4ac] ss:$16 sps:$4 sm:$0xff]  }
 0x3a5   : > { %v1891_v63 = vpop.f32.mrb[18].mxu1  ;;  %v1890_v1 = vadd.f32 %v1889_v61, %v1680_v59  ;;  %v3840_v59 = vld [vmem:[%s4341_s21 + $0x4a8] ss:$16 sps:$4 sm:$0xff]   ;;  %v3845_v61 = vld [vmem:[%s4341_s21 + $0x4cc] ss:$16 sps:$4 sm:$0xff]  }
 0x3a6   : > { %v1892_v2 = vpop.f32.mrb[19].mxu1  ;;  %v1935_v7 = vpack.c.bf16 %v1888_v3, %v1888_v3  ;;  %v3843_v62 = vld [vmem:[%s4341_s21 + $0x4c8] ss:$16 sps:$4 sm:$0xff]   ;;  %v3848_v63 = vld [vmem:[%s4341_s21 + $0x4ec] ss:$16 sps:$4 sm:$0xff]  }
 0x3a7   : > { %1909 = vmatpush1.bf16.msra.mxu0 %v3792_v51  ;;  %v1936_v5 = vpack.c.bf16 %v1890_v1, %v1890_v1  ;;  %v3833_v51 = vld [vmem:[%s4341_s21 + $0x46c] ss:$16 sps:$4 sm:$0xff]   ;;  %v3846_v1 = vld [vmem:[%s4341_s21 + $0x4e8] ss:$16 sps:$4 sm:$0xff]   ;;  %v3851_v2 = vld [vmem:[%s4354_s14 + $0x84] ss:$16 sps:$4 sm:$0xff]  }
 0x3a8   : > { %2276 = vmatprep.subr.bf16.mxu0 %v3800_v4  ;;  %v3849_v3 = vld [vmem:[%s4354_s14 + $0x80] ss:$16 sps:$4 sm:$0xff]  }
 0x3a9   : > { %2004 = vmatprep.mubr.bf16.mxu1 %v1936_v5  ;;  %v4633_v4 = vld [vmem:[%s4348_s10 + $0x10] sm:$0xf] }
 0x3aa   : > { %1927 = vmatmul.mubr.bf16.vlgmr.msra.gmra.mrb[20].mxu0 %v4572_v52  ;;  %2005 = vmatmul.mubr.bf16.vlgmr.msra.gmra.mrb[20].mxu1 %v1935_v7 }
 0x3ab   : > { %2308 = vmatprep.mubr.bf16.mxu0 %v4107_v0  ;;  %2277 = vmatpush1.bf16.msra.mxu0 %v3798_v6  ;;  %v2103_v6 = vrot.slane %v4633_v4, %v4427_v57 }
 0x3ac   : > { %2278 = vmatprep.subr.bf16.mxu0 %v3806_v8  ;;  %2013 = vmatpush1.bf16.xpose.msra.mxu1 %v3801_v12  ;;  %v2099_v8 = vrot.slane %v4633_v4, %v4424_v55 }
 0x3ad   : > { %2317 = vmatprep.subr.bf16.mxu1 %v3815_v17 }
 0x3af   : > { %2279 = vmatpush1.bf16.msra.mxu0 %v3804_v10 }
 0x3b0   : > { %2280 = vmatprep.subr.bf16.mxu0 %v3809_v14  ;;  %v3854_v14 = vld [vmem:[%s4341_s21 + $0x504] ss:$16 sps:$4 sm:$0xff]  }
 0x3b3   : > { %2281 = vmatpush1.bf16.msra.mxu0 %v3807_v13 }
 0x3b4   : > { %2282 = vmatprep.subr.bf16.mxu0 %v3812_v15 }
 0x3b7   : > { %2283 = vmatpush1.bf16.msra.mxu0 %v3810_v16  ;;  %v3852_v16 = vld [vmem:[%s4341_s21 + $0x500] ss:$16 sps:$4 sm:$0xff]  }
 0x3b8   : > { %2284 = vmatprep.subr.bf16.mxu0 %v3818_v18  ;;  %v3860_v18 = vld [vmem:[%s4341_s21 + $0x524] ss:$16 sps:$4 sm:$0xff]  }
 0x3bb   : > { %2285 = vmatpush1.bf16.msra.mxu0 %v3816_v19  ;;  %v3858_v19 = vld [vmem:[%s4341_s21 + $0x520] ss:$16 sps:$4 sm:$0xff]  }
 0x3bc   : > { %2286 = vmatprep.subr.bf16.mxu0 %v3824_v21  ;;  %v3855_v21 = vld [vmem:[%s4354_s14 + $0x88] ss:$16 sps:$4 sm:$0xff]  }
 0x3bf   : > { %2287 = vmatpush1.bf16.msra.mxu0 %v3822_v20  ;;  %v3857_v20 = vld [vmem:[%s4354_s14 + $0x8c] ss:$16 sps:$4 sm:$0xff]  }
 0x3c0   : > { %2288 = vmatprep.subr.bf16.mxu0 %v3830_v23  ;;  %v3863_v23 = vld [vmem:[%s4341_s21 + $0x544] ss:$16 sps:$4 sm:$0xff]  }
 0x3c3   : > { %2289 = vmatpush1.bf16.msra.mxu0 %v3828_v22  ;;  %v3861_v22 = vld [vmem:[%s4341_s21 + $0x540] ss:$16 sps:$4 sm:$0xff]  }
 0x3c4   : > { %2290 = vmatprep.subr.bf16.mxu0 %v3836_v25  ;;  %v3864_v25 = vld [vmem:[%s4341_s21 + $0x560] ss:$16 sps:$4 sm:$0xff]  }
 0x3c7   : > { %2291 = vmatpush1.bf16.msra.mxu0 %v3834_v24  ;;  %v3866_v24 = vld [vmem:[%s4341_s21 + $0x564] ss:$16 sps:$4 sm:$0xff]  }
 0x3c8   : > { %2395 = vmatprep.subr.bf16.mxu0 %v3851_v2  ;;  %v3885_v2 = vld [vmem:[%s4341_s21 + $0x568] ss:$16 sps:$4 sm:$0xff]  }
 0x3ca   : > { %2309 = vmatmul.mubr.bf16.vlgmr.msra.gmra.mrb[24].mxu0 %v4572_v52 }
 0x3d0   : > { %2396 = vmatpush1.bf16.xpose.msra.mxu0 %v3849_v3  ;;  %v3893_v3 = vld [vmem:[%s4341_s21 + $0x58c] ss:$16 sps:$4 sm:$0xff]  }
 0x3d1   : > { %2435 = vmatprep.subr.bf16.mxu0 %v3857_v20 }
 0x45d   : > { %v1623_v33 = vpop.f32.mrb[16].mxu0 }
 0x45e   : > { %v3489_v27 = vadd.f32 %v3237_v26, %v1623_v33  ;;  %v1625_v28 = vpop.f32.mrb[17].mxu0  ;;  %v3869_v26 = vld [vmem:[%s4341_s21 + $0x50c] ss:$16 sps:$4 sm:$0xff]   ;;  %v3872_v33 = vld [vmem:[%s4341_s21 + $0x584] ss:$16 sps:$4 sm:$0xff]  }
 0x45f   : > { %v1626_v29 = vpop.f32.mrb[18].mxu0  ;;  %v3876_v28 = vld [vmem:[%s4341_s21 + $0x5a0] ss:$16 sps:$4 sm:$0xff]  }
 0x460   : > { %v3242_v30 = vmul.f32 -1.442695, %v3489_v27  ;;  %v1627_v31 = vpop.f32.mrb[19].mxu0  ;;  %v3870_v27 = vld [vmem:[%s4341_s21 + $0x580] ss:$16 sps:$4 sm:$0xff]  }
 0x461   : > { %v3878_v29 = vld [vmem:[%s4341_s21 + $0x5a4] ss:$16 sps:$4 sm:$0xff]  }
 0x462   : > { %3917 = vpow2.f32 %v3242_v30  ;;  %v3882_v30 = vld [vmem:[%s4341_s21 + $0x5c0] ss:$16 sps:$4 sm:$0xff]   ;;  %v3884_v31 = vld [vmem:[%s4341_s21 + $0x5c4] ss:$16 sps:$4 sm:$0xff]  }
 0x46c   : > { %v3918_v32 = vpop.eup %3917 }
 0x46d   : > { %v1632_v34 = vadd.f32 1.0, %v3918_v32  ;;  %v3888_v32 = vld [vmem:[%s4341_s21 + $0x5e0] ss:$16 sps:$4 sm:$0xff]  }
 0x46f   : > { %3919 = vrcp.f32 %v1632_v34  ;;  %v3890_v34 = vld [vmem:[%s4341_s21 + $0x5e4] ss:$16 sps:$4 sm:$0xff]  }
 0x479   : > { %v3920_v35 = vpop.eup %3919 }
 0x47a   : > { %3243 = vst.msk [vmem:[%s4491_s6 + $0x4] sm:$0x3] %vm789_vm0, %v3920_v35  ;;  %v3314_v35 = vld [vmem:[%s4356_s12 + $0x3] ss:$0 sm:$0xff] }
 0x47d   : > { %v1928_v38 = vpop.f32.mrb[20].mxu0 }
 0x47e   : > { %v1929_v39 = vadd.f32 %v1928_v38, %v1684_v36  ;;  %v1930_v40 = vpop.f32.mrb[21].mxu0 }
 0x47f   : > { %v1931_v41 = vadd.f32 %v1930_v40, %v1688_v37  ;;  %v1932_v42 = vpop.f32.mrb[22].mxu0 }
 0x480   : > { %v1933_v43 = vpop.f32.mrb[23].mxu0  ;;  %v1937_v46 = vpack.c.bf16 %v1929_v39, %v1929_v39 }
 0x481   : > { %v1938_v44 = vpack.c.bf16 %v1931_v41, %v1931_v41 }
 0x483   : > { %2044 = vmatprep.mubr.bf16.mxu1 %v1938_v44 }
 0x484   : > { %2045 = vmatmul.mubr.bf16.vlgmr.msra.gmra.mrb[20].mxu1 %v1937_v46  ;;  %v2111_v46 = vrot.slane %v4633_v4, %v4431_v60 }
 0x485   : > { %2318 = vmatpush1.bf16.msra.mxu1 %v3813_v45  ;;  %2349 = vmatprep.mubr.bf16.mxu1 %v4107_v0  ;;  %v2107_v45 = vrot.slane %v4633_v4, %v4435_v9  ;;  %v3891_v4 = vld [vmem:[%s4341_s21 + $0x588] ss:$16 sps:$4 sm:$0xff]  }
 0x486   : > { %2319 = vmatprep.subr.bf16.mxu1 %v3821_v47 }
 0x489   : > { %2320 = vmatpush1.bf16.msra.mxu1 %v3819_v48 }
 0x48a   : > { %2321 = vmatprep.subr.bf16.mxu1 %v3827_v49 }
 0x48d   : > { %2322 = vmatpush1.bf16.msra.mxu1 %v3825_v50 }
 0x48e   : > { %2323 = vmatprep.subr.bf16.mxu1 %v3833_v51 }
 0x491   : > { %2324 = vmatpush1.bf16.msra.mxu1 %v3831_v53 }
 0x492   : > { %2325 = vmatprep.subr.bf16.mxu1 %v3839_v54 }
 0x495   : > { %2326 = vmatpush1.bf16.msra.mxu1 %v3837_v56  ;;  %v3867_v56 = vld [vmem:[%s4341_s21 + $0x508] ss:$16 sps:$4 sm:$0xff]  }
 0x496   : > { %2327 = vmatprep.subr.bf16.mxu1 %v3842_v58 }
 0x499   : > { %2328 = vmatpush1.bf16.msra.mxu1 %v3840_v59  ;;  %v3875_v59 = vld [vmem:[%s4341_s21 + $0x52c] ss:$16 sps:$4 sm:$0xff]  }
 0x49a   : > { %2329 = vmatprep.subr.bf16.mxu1 %v3845_v61  ;;  %v3873_v61 = vld [vmem:[%s4341_s21 + $0x528] ss:$16 sps:$4 sm:$0xff]  }
 0x49d   : > { %2330 = vmatpush1.bf16.msra.mxu1 %v3843_v62  ;;  %v2310_v5 = vpop.f32.mrb[24].mxu0  ;;  %v3881_v62 = vld [vmem:[%s4341_s21 + $0x54c] ss:$16 sps:$4 sm:$0xff]  }
 0x49e   : > { %2331 = vmatprep.subr.bf16.mxu1 %v3848_v63  ;;  %v2312_v7 = vpop.f32.mrb[25].mxu0  ;;  %v2311_v13 = vadd.f32 %v2310_v5, %v2099_v8  ;;  %v3879_v63 = vld [vmem:[%s4341_s21 + $0x548] ss:$16 sps:$4 sm:$0xff]   ;;  %v3902_v8 = vld [vmem:[%s4341_s21 + $0x5ec] ss:$16 sps:$4 sm:$0xff]  }
 0x49f   : > { %v2314_v10 = vpop.f32.mrb[26].mxu0  ;;  %v2313_v11 = vadd.f32 %v2312_v7, %v2103_v6  ;;  %v3894_v5 = vld [vmem:[%s4341_s21 + $0x5a8] ss:$16 sps:$4 sm:$0xff]   ;;  %v3899_v6 = vld [vmem:[%s4341_s21 + $0x5cc] ss:$16 sps:$4 sm:$0xff]  }
 0x4a0   : > { %v2315_v12 = vpop.f32.mrb[27].mxu0  ;;  %v2358_v17 = vpack.c.bf16 %v2311_v13, %v2311_v13  ;;  %v3897_v7 = vld [vmem:[%s4341_s21 + $0x5c8] ss:$16 sps:$4 sm:$0xff]   ;;  %v3430_v13 = vld [vmem:[%s4348_s10 + $0x14] sm:$0xf] }
 0x4a1   : > { %2332 = vmatpush1.bf16.msra.mxu1 %v3846_v1  ;;  %v2359_v15 = vpack.c.bf16 %v2313_v11, %v2313_v11  ;;  %v3887_v1 = vld [vmem:[%s4341_s21 + $0x56c] ss:$16 sps:$4 sm:$0xff]   ;;  %v3900_v10 = vld [vmem:[%s4341_s21 + $0x5e8] ss:$16 sps:$4 sm:$0xff]   ;;  %v3905_v11 = vld [vmem:[%s4354_s14 + $0xa4] ss:$16 sps:$4 sm:$0xff]  }
 0x4a2   : > { %2699 = vmatprep.subr.bf16.mxu1 %v3854_v14  ;;  %v3903_v12 = vld [vmem:[%s4354_s14 + $0xa0] ss:$16 sps:$4 sm:$0xff]  }
 0x4a3   : > { %2427 = vmatprep.mubr.bf16.mxu0 %v2359_v15  ;;  %v2526_v15 = vrot.slane %v3430_v13, %v4427_v57 }
 0x4a4   : > { %2350 = vmatmul.mubr.bf16.vlgmr.msra.gmra.mrb[24].mxu1 %v4572_v52  ;;  %2428 = vmatmul.mubr.bf16.vlgmr.msra.gmra.mrb[28].mxu0 %v2358_v17  ;;  %v2522_v17 = vrot.slane %v3430_v13, %v4424_v55 }
 0x4a5   : > { %2731 = vmatprep.mubr.bf16.mxu1 %v4107_v0  ;;  %2700 = vmatpush1.bf16.msra.mxu1 %v3852_v16 }
 0x4a6   : > { %2701 = vmatprep.subr.bf16.mxu1 %v3860_v18  ;;  %2436 = vmatpush1.bf16.xpose.msra.mxu0 %v3855_v21 }
 0x4a7   : > { %2740 = vmatprep.subr.bf16.mxu0 %v3869_v26 }
 0x4a9   : > { %2702 = vmatpush1.bf16.msra.mxu1 %v3858_v19 }
 0x4aa   : > { %2703 = vmatprep.subr.bf16.mxu1 %v3863_v23  ;;  %v3906_v23 = vld [vmem:[%s4354_s14 + $0xa8] ss:$16 sps:$4 sm:$0xff]  }
 0x4ad   : > { %2704 = vmatpush1.bf16.msra.mxu1 %v3861_v22 }
 0x4ae   : > { %2705 = vmatprep.subr.bf16.mxu1 %v3866_v24  ;;  %v3908_v24 = vld [vmem:[%s4354_s14 + $0xac] ss:$16 sps:$4 sm:$0xff]  }
 0x4b1   : > { %2706 = vmatpush1.bf16.msra.mxu1 %v3864_v25  ;;  %v3391_v25 = vld [vmem:[%s4356_s12 + $0x4] ss:$0 sm:$0xff] }
 0x4b2   : > { %2707 = vmatprep.subr.bf16.mxu1 %v3872_v33 }
 0x4b5   : > { %2708 = vmatpush1.bf16.msra.mxu1 %v3870_v27 }
 0x4b6   : > { %2709 = vmatprep.subr.bf16.mxu1 %v3878_v29 }
 0x4b9   : > { %2710 = vmatpush1.bf16.msra.mxu1 %v3876_v28 }
 0x4ba   : > { %2711 = vmatprep.subr.bf16.mxu1 %v3884_v31 }
 0x4bd   : > { %2712 = vmatpush1.bf16.msra.mxu1 %v3882_v30 }
 0x4be   : > { %2713 = vmatprep.subr.bf16.mxu1 %v3890_v34  ;;  %v2534_v34 = vrot.slane %v3430_v13, %v4431_v60 }
 0x4c1   : > { %2714 = vmatpush1.bf16.msra.mxu1 %v3888_v32  ;;  %v2530_v32 = vrot.slane %v3430_v13, %v4435_v9 }
 0x4c2   : > { %2818 = vmatprep.subr.bf16.mxu1 %v3905_v11 }
 0x4c4   : > { %2732 = vmatmul.mubr.bf16.vlgmr.msra.gmra.mrb[28].mxu1 %v4572_v52 }
 0x4ca   : > { %2819 = vmatpush1.bf16.xpose.msra.mxu1 %v3903_v12 }
 0x4cb   : > { %2858 = vmatprep.subr.bf16.mxu1 %v3908_v24 }
 0x557   : > { %v2046_v36 = vpop.f32.mrb[20].mxu1 }
 0x558   : > { %v3490_v37 = vadd.f32 %v3314_v35, %v2046_v36  ;;  %v2048_v38 = vpop.f32.mrb[21].mxu1 }
 0x559   : > { %v2049_v39 = vpop.f32.mrb[22].mxu1 }
 0x55a   : > { %v3319_v40 = vmul.f32 -1.442695, %v3490_v37  ;;  %v2050_v41 = vpop.f32.mrb[23].mxu1 }
 0x55c   : > { %3921 = vpow2.f32 %v3319_v40 }
 0x566   : > { %v3922_v42 = vpop.eup %3921 }
 0x567   : > { %v2055_v43 = vadd.f32 1.0, %v3922_v42 }
 0x569   : > { %3923 = vrcp.f32 %v2055_v43  ;;  %v3468_v43 = vld [vmem:[%s4356_s12 + $0x5] ss:$0 sm:$0xff] }
 0x573   : > { %v3924_v44 = vpop.eup %3923 }
 0x574   : > { %3320 = vst.msk [vmem:[%s4491_s6 + $0x6] sm:$0x3] %vm789_vm0, %v3924_v44 }
 0x577   : > { %v2351_v47 = vpop.f32.mrb[24].mxu1 }
 0x578   : > { %v2352_v48 = vadd.f32 %v2351_v47, %v2107_v45  ;;  %v2353_v49 = vpop.f32.mrb[25].mxu1 }
 0x579   : > { %v2354_v50 = vadd.f32 %v2353_v49, %v2111_v46  ;;  %v2355_v51 = vpop.f32.mrb[26].mxu1 }
 0x57a   : > { %v2356_v53 = vpop.f32.mrb[27].mxu1  ;;  %v2360_v58 = vpack.c.bf16 %v2352_v48, %v2352_v48 }
 0x57b   : > { %v2361_v54 = vpack.c.bf16 %v2354_v50, %v2354_v50 }
 0x57d   : > { %2467 = vmatprep.mubr.bf16.mxu0 %v2361_v54 }
 0x57e   : > { %2468 = vmatmul.mubr.bf16.vlgmr.msra.gmra.mrb[28].mxu0 %v2360_v58 }
 0x57f   : > { %2741 = vmatpush1.bf16.msra.mxu0 %v3867_v56  ;;  %2772 = vmatprep.mubr.bf16.mxu0 %v4107_v0  ;;  %v3896_v0 = vld [vmem:[%s4341_s21 + $0x5ac] ss:$16 sps:$4 sm:$0xff]  }
 0x580   : > { %2742 = vmatprep.subr.bf16.mxu0 %v3875_v59 }
 0x583   : > { %2743 = vmatpush1.bf16.msra.mxu0 %v3873_v61 }
 0x584   : > { %2744 = vmatprep.subr.bf16.mxu0 %v3881_v62 }
 0x587   : > { %2745 = vmatpush1.bf16.msra.mxu0 %v3879_v63 }
 0x588   : > { %2746 = vmatprep.subr.bf16.mxu0 %v3887_v1 }
 0x58b   : > { %2747 = vmatpush1.bf16.msra.mxu0 %v3885_v2 }
 0x58c   : > { %2748 = vmatprep.subr.bf16.mxu0 %v3893_v3 }
 0x58f   : > { %2749 = vmatpush1.bf16.msra.mxu0 %v3891_v4 }
 0x590   : > { %2750 = vmatprep.subr.bf16.mxu0 %v3896_v0 }
 0x593   : > { %2751 = vmatpush1.bf16.msra.mxu0 %v3894_v5 }
 0x594   : > { %2752 = vmatprep.subr.bf16.mxu0 %v3899_v6 }
 0x597   : > { %2753 = vmatpush1.bf16.msra.mxu0 %v3897_v7  ;;  %v2733_v14 = vpop.f32.mrb[28].mxu1 }
 0x598   : > { %2754 = vmatprep.subr.bf16.mxu0 %v3902_v8  ;;  %v2735_v16 = vpop.f32.mrb[29].mxu1  ;;  %v2734_v21 = vadd.f32 %v2733_v14, %v2522_v17 }
 0x599   : > { %v2737_v18 = vpop.f32.mrb[30].mxu1  ;;  %v2736_v19 = vadd.f32 %v2735_v16, %v2526_v15 }
 0x59a   : > { %v2738_v20 = vpop.f32.mrb[31].mxu1 }
 0x59b   : > { %2755 = vmatpush1.bf16.msra.mxu0 %v3900_v10  ;;  %v2782_v22 = vpack.c.bf16 %v2736_v19, %v2736_v19 }
 0x59d   : > { %2850 = vmatprep.mubr.bf16.mxu1 %v2782_v22 }
 0x59e   : > { %2773 = vmatmul.mubr.bf16.vlgmr.msra.gmra.mrb[32].mxu0 %v4572_v52  ;;  %v2781_v52 = vpack.c.bf16 %v2734_v21, %v2734_v21 }
 0x5a0   : > { %2851 = vmatmul.mubr.bf16.vlgmr.msra.gmra.mrb[32].mxu1 %v2781_v52 }
 0x5a1   : > { %2859 = vmatpush1.bf16.xpose.msra.mxu1 %v3906_v23 }
 0x651   : > { %v2469_v57 = vpop.f32.mrb[28].mxu0 }
 0x652   : > { %v3491_v26 = vadd.f32 %v3391_v25, %v2469_v57  ;;  %v2471_v33 = vpop.f32.mrb[29].mxu0 }
 0x653   : > { %v2472_v27 = vpop.f32.mrb[30].mxu0 }
 0x654   : > { %v3396_v28 = vmul.f32 -1.442695, %v3491_v26  ;;  %v2473_v55 = vpop.f32.mrb[31].mxu0 }
 0x656   : > { %3925 = vpow2.f32 %v3396_v28 }
 0x660   : > { %v3926_v29 = vpop.eup %3925 }
 0x661   : > { %v2478_v30 = vadd.f32 1.0, %v3926_v29 }
 0x663   : > { %3927 = vrcp.f32 %v2478_v30 }
 0x66d   : > { %v3928_v31 = vpop.eup %3927 }
 0x66e   : > { %3397 = vst.msk [vmem:[%s4491_s6 + $0x8] sm:$0x3] %vm789_vm0, %v3928_v31 }
 0x671   : > { %v2774_v35 = vpop.f32.mrb[32].mxu0 }
 0x672   : > { %v2775_v36 = vadd.f32 %v2774_v35, %v2530_v32  ;;  %v2776_v37 = vpop.f32.mrb[33].mxu0 }
 0x673   : > { %v2777_v38 = vadd.f32 %v2776_v37, %v2534_v34  ;;  %v2778_v39 = vpop.f32.mrb[34].mxu0 }
 0x674   : > { %v2779_v40 = vpop.f32.mrb[35].mxu0  ;;  %v2783_v42 = vpack.c.bf16 %v2775_v36, %v2775_v36 }
 0x675   : > { %v2784_v41 = vpack.c.bf16 %v2777_v38, %v2777_v38 }
 0x677   : > { %2890 = vmatprep.mubr.bf16.mxu1 %v2784_v41 }
 0x678   : > { %2891 = vmatmul.mubr.bf16.vlgmr.msra.gmra.mrb[32].mxu1 %v2783_v42 }
 0x74b   : > { %v2892_v44 = vpop.f32.mrb[32].mxu1 }
 0x74c   : > { %v3492_v45 = vadd.f32 %v3468_v43, %v2892_v44  ;;  %v2894_v46 = vpop.f32.mrb[33].mxu1 }
 0x74d   : > { %v2895_v47 = vpop.f32.mrb[34].mxu1 }
 0x74e   : > { %v3473_v48 = vmul.f32 -1.442695, %v3492_v45  ;;  %v2896_v9 = vpop.f32.mrb[35].mxu1 }
 0x750   : > { %3929 = vpow2.f32 %v3473_v48 }
 0x75a   : > { %v3930_v60 = vpop.eup %3929 }
 0x75b   : > { %v2901_v49 = vadd.f32 1.0, %v3930_v60 }
 0x75d   : > { %3931 = vrcp.f32 %v2901_v49 }
 0x767   : > { %v3932_v50 = vpop.eup %3931 }
 0x768   : > { %3474 = vst.msk [vmem:[%s4491_s6 + $0xa] sm:$0x3] %vm789_vm0, %v3932_v50 }
 0x769 PF: > { %p21_p3 = scmp.ge.s32.totalorder %s4160_s23, 4   ;;  %s4726_s18 = smov %s4088_s19 }
 0x76a   : > { %s4727_s19 = smov %s4092_s20  ;;  %s4728_s20 = smov %s4170_s26 }
 0x76b   : > { %s4729_s21 = smov %s4160_s23  ;;  %23 = sbr.rel (!%p21_p3) target bundleno = 9 (0x9), region = 142 }
 0x772   :  { %2928 = vsyncpa [#allocation3], 1 }
 0x773   :  { %2930 = vsyncpa [#allocation3 + $0x1], 1 }
 0x774   :  { %2931 = vsyncpa [#allocation5], 1 }
 0x775   :  { %2933 = vsyncpa [#allocation5 + $0x1], 1 }
 0x776   :  { %2934 = vsyncpa [#allocation8], 1 }
 0x777   :  { %2936 = vsyncpa [#allocation8 + $0x1], 1 }

</bundles_post_ra>
